<compile_context>
chip_gen: v6e
topology: v6e:2x2x1
jax: 0.10.0
libtpu: 0.0.40
codegen_flags: <defaults>
</compile_context>

<pallas_src>
import jax
import jax.numpy as jnp
from jax import lax
from jax.experimental import pallas as pl
from jax.experimental.pallas import tpu as pltpu

# ---- hyperparameters (the `opt` of the PyTorch module) ---------------------
VOCAB_SIZE = 50
EMBEDDING_SIZE = 16
HIDDEN_SIZE = 4                         # H
C = 2 * HIDDEN_SIZE                     # 2H = 8
KERNEL_SIZE = C                         # square (k, 2H) kernel, k = 2H
PAD_H = KERNEL_SIZE // 2                # sequence padding per side (reference)
ENC_LAYERS = 2

LANES = 128                             # f32 lane tile
SUB = 8                                 # f32 sublane tile

VMEM_SPEC = pl.BlockSpec(memory_space=pltpu.MemorySpace.VMEM)


def _rup(x, m):
    return (x + m - 1) // m * m


# ---- packed parameter slab layout (8-aligned row offsets, 128 lanes) -------
VOCAB_PAD = _rup(VOCAB_SIZE, SUB)                 # 56 (rows 50..55 are zero)
EMB_OFF = 0                                       # embedding   (50, 16)
AFF_W_OFF = EMB_OFF + VOCAB_PAD                   # w_affine    (16,  8)
AFF_B_OFF = AFF_W_OFF + EMBEDDING_SIZE            # b_affine    ( 1,  8)
CONV_W_OFF = AFF_B_OFF + SUB                      # w_conv flat (64,  8)
CONV_B_OFF = CONV_W_OFF + KERNEL_SIZE * C         # b_conv      ( 1,  8)
MAP_W_OFF = CONV_B_OFF + SUB                      # w_map       ( 4,  8)
MAP_B_OFF = MAP_W_OFF + SUB                       # b_map       ( 1,  8)
SLAB_ROWS = MAP_B_OFF + SUB                       # 168 rows total


def pack_params(params):
    """One-time host-side packing of all parameters into a single f32 slab."""
    def blk(x, rows):
        r, c = x.shape
        return jnp.pad(x.astype(jnp.float32), ((0, rows - r), (0, LANES - c)))

    # hoisted conv-weight re-layout: (kh, kw=2H, 2H) -> im2col (kh*2H, 2H)
    w_conv_flat = params["w_conv"].reshape(KERNEL_SIZE * C, C)
    return jnp.concatenate(
        [
            blk(params["embedding"], VOCAB_PAD),
            blk(params["w_affine"], EMBEDDING_SIZE),
            blk(params["b_affine"], SUB),
            blk(w_conv_flat, KERNEL_SIZE * C),
            blk(params["b_conv"], SUB),
            blk(params["w_map"], SUB),
            blk(params["b_map"], SUB),
        ],
        axis=0,
    )                                              # (168, 128) f32


# ---------------------------- fused Pallas kernel ----------------------------
def _make_fused_kernel(batch, seq_len):
    """Whole forward in one kernel body; batch / seq_len are static."""
    H = HIDDEN_SIZE
    KH = KERNEL_SIZE
    N = batch * seq_len
    l_final = seq_len + ENC_LAYERS * (2 * PAD_H - KH + 1)   # +1 per layer
    n_attn = batch * l_final
    sum_rows = _rup(batch, SUB)                    # summed block rows (8)
    out_rows = sum_rows + _rup(n_attn, SUB)        # merged output slab rows

    def kernel(tok_ref, p_ref, out_ref):
        f32 = jnp.float32

        # ------ static slices into the packed parameter slab ------
        emb_w = p_ref[EMB_OFF:EMB_OFF + VOCAB_PAD, 0:EMBEDDING_SIZE]   # (56,16)
        w_aff = p_ref[AFF_W_OFF:AFF_W_OFF + EMBEDDING_SIZE, 0:C]       # (16, 8)
        b_aff = p_ref[AFF_B_OFF:AFF_B_OFF + 1, 0:C]                    # ( 1, 8)
        w_conv = p_ref[CONV_W_OFF:CONV_W_OFF + KH * C, 0:C]            # (64, 8)
        b_conv = p_ref[CONV_B_OFF:CONV_B_OFF + 1, 0:C]                 # ( 1, 8)
        w_map = p_ref[MAP_W_OFF:MAP_W_OFF + H, 0:C]                    # ( 4, 8)
        b_map = p_ref[MAP_B_OFF:MAP_B_OFF + 1, 0:C]                    # ( 1, 8)

        # ------ embedding lookup as a one-hot matmul (no gather op) ------
        tok = tok_ref[...]                                             # (N,1) i32
        v_iota = lax.broadcasted_iota(jnp.int32, (N, VOCAB_PAD), 1)
        one_hot = (v_iota == tok).astype(f32)                          # (N,56)
        emb = jnp.dot(one_hot, emb_w, preferred_element_type=f32)      # (N,16)

        # ------ affine ------
        aff = jnp.dot(emb, w_aff, preferred_element_type=f32) + b_aff  # (N, 8)

        # hoisted zero block (JAX does not CSE broadcast_in_dim)
        zeros8 = jnp.zeros((SUB, C), f32)

        # rows are batch-major: row b*L + l
        xs = [aff[b * seq_len:(b + 1) * seq_len, :] for b in range(batch)]
        attns = None
        l_cur = seq_len
        for _ in range(ENC_LAYERS):
            l_out = l_cur + 2 * PAD_H - KH + 1                  # = l_cur + 1
            seg_pad = (-l_cur) % SUB
            seg = SUB + l_cur + seg_pad                         # 8-aligned segment
            zseg = jnp.zeros((seg_pad, C), f32) if seg_pad else None

            # one combined zero-separated buffer for ALL batches:
            #   [8 zeros | x_b | pad-to-8] per batch, plus 8 trailing zeros
            pieces = []
            for b in range(batch):
                pieces.append(zeros8)
                pieces.append(xs[b])
                if seg_pad:
                    pieces.append(zseg)
            pieces.append(zeros8)
            comb = jnp.concatenate(pieces, axis=0)              # (T, 8)
            t_out = batch * seg + SUB - KH + 1

            # im2col patches -> ONE MXU matmul for all batches
            patches = jnp.concatenate(
                [comb[dh:dh + t_out, :] for dh in range(KH)], axis=-1)  # (t_out,64)
            z = jnp.dot(patches, w_conv, preferred_element_type=f32) + b_conv
            z = jnp.maximum(z, 0.0)                             # F.relu
            a = z[:, :H]                                        # GLU split -> A
            g = z[:, H:]                                        #           -> B
            m = jnp.max(g, axis=-1, keepdims=True)              # softmax(B)
            e = jnp.exp(g - m)
            inv = pl.reciprocal(jnp.sum(e, axis=-1, keepdims=True), approx=True)
            attn_all = a * (e * inv)                            # (t_out, H)
            y_all = jnp.dot(attn_all, w_map,
                            preferred_element_type=f32) + b_map  # (t_out, 8)

            # valid output rows for batch b start at b*seg + 8 - PAD_H
            starts = [b * seg + SUB - PAD_H for b in range(batch)]
            xs = [y_all[s:s + l_out, :] for s in starts]
            attns = [attn_all[s:s + l_out, :] for s in starts]
            l_cur = l_out

        # ------ single lane-dense output slab ------
        # rows [0, B):            summed  (cols 0..2H-1)
        # rows [8, 8+B*L_final):  attn    (cols 0..H-1)
        summed = jnp.concatenate(
            [jnp.sum(xs[b], axis=0, keepdims=True) for b in range(batch)], axis=0)
        attn_cat = jnp.concatenate(attns, axis=0)               # (n_attn, H)

        blocks = [jnp.concatenate(
            [summed, jnp.zeros((batch, LANES - C), f32)], axis=-1)]
        if sum_rows > batch:
            blocks.append(jnp.zeros((sum_rows - batch, LANES), f32))
        blocks.append(jnp.concatenate(
            [attn_cat, jnp.zeros((n_attn, LANES - H), f32)], axis=-1))
        tail = out_rows - sum_rows - n_attn
        if tail:
            blocks.append(jnp.zeros((tail, LANES), f32))
        out_ref[...] = jnp.concatenate(blocks, axis=0)

    return kernel, out_rows


# ------------------------------- wrapper -------------------------------------
@jax.jit
def decoder_forward(tokens, param_slab):
    """tokens: (L, B) int32 (the PyTorch `target`); param_slab: pack_params(p)."""
    l, b = tokens.shape
    l_final = l + ENC_LAYERS * (2 * PAD_H - KERNEL_SIZE + 1)
    n_attn = b * l_final
    sum_rows = _rup(b, SUB)

    kernel, out_rows = _make_fused_kernel(b, l)

    # batch-major token column (token id varies along sublanes for the one-hot)
    tok_col = tokens.transpose(1, 0).reshape(b * l, 1).astype(jnp.int32)

    out = pl.pallas_call(
        kernel,
        out_shape=jax.ShapeDtypeStruct((out_rows, LANES), jnp.float32),
        in_specs=[VMEM_SPEC, VMEM_SPEC],
        out_specs=VMEM_SPEC,
    )(tok_col, param_slab)

    summed = out[0:b, 0:C]                                   # (B, 2H)
    attn = out[sum_rows:sum_rows + n_attn, 0:HIDDEN_SIZE]    # (B*L_final, H)
    return summed, attn


# --------------------------- parameter construction --------------------------
def init_params(key):
    ks = jax.random.split(key, 7)

    def u(k, shape, fan_in):
        bound = 1.0 / jnp.sqrt(float(fan_in))
        return jax.random.uniform(k, shape, jnp.float32, -bound, bound)

    return {
        # nn.Embedding(vocab, E)
        "embedding": jax.random.normal(ks[0], (VOCAB_SIZE, EMBEDDING_SIZE),
                                       jnp.float32),
        # nn.Linear(E, 2H)  (stored as (E, 2H) for x @ W)
        "w_affine": u(ks[1], (EMBEDDING_SIZE, C), EMBEDDING_SIZE),
        "b_affine": u(ks[2], (1, C), EMBEDDING_SIZE),
        # nn.Conv2d(1, 2H, k): weight laid out as (kh, kw=2H, 2H_out)
        "w_conv": u(ks[3], (KERNEL_SIZE, KERNEL_SIZE, C),
                    KERNEL_SIZE * KERNEL_SIZE),
        "b_conv": u(ks[4], (1, C), KERNEL_SIZE * KERNEL_SIZE),
        # nn.Linear(H, 2H)
        "w_map": u(ks[5], (HIDDEN_SIZE, C), HIDDEN_SIZE),
        "b_map": u(ks[6], (1, C), HIDDEN_SIZE),
    }


if __name__ == "__main__":
    key = jax.random.PRNGKey(0)
    pkey, tkey = jax.random.split(key)
    params = init_params(pkey)
    param_slab = pack_params(params)     # packed ONCE, reused across all calls

    L, B = 8, 2
    tokens = jax.random.randint(tkey, (L, B), 0, VOCAB_SIZE, dtype=jnp.int32)

    out, attn = decoder_forward(tokens, param_slab)
    jax.block_until_ready((out, attn))

    L_final = L + ENC_LAYERS * (2 * PAD_H - KERNEL_SIZE + 1)
    assert out.shape == (B, 2 * HIDDEN_SIZE), out.shape
    assert attn.shape == (B * L_final, HIDDEN_SIZE), attn.shape
    assert bool(jnp.all(jnp.isfinite(out))) and bool(jnp.all(jnp.isfinite(attn)))
    print("KERNEL_OK")
</pallas_src>

<mosaic_0001>
module attributes {stable_mosaic.version = 11 : i64} {
  func.func @kernel(%arg0: memref<16x1xi32, #tpu.memory_space<vmem>>, %arg1: memref<168x128xf32, #tpu.memory_space<vmem>>, %arg2: memref<32x128xf32, #tpu.memory_space<vmem>>) attributes {dimension_semantics = [], scalar_prefetch = 0 : i64, scratch_operands = 0 : i64, tpu.core_type = #tpu.core_type<tc>} {
    %c0 = arith.constant 0 : index
    %c0_0 = arith.constant 0 : index
    %0 = vector.load %arg1[%c0, %c0_0] : memref<168x128xf32, #tpu.memory_space<vmem>>, vector<56x16xf32>
    %c56 = arith.constant 56 : index
    %c0_1 = arith.constant 0 : index
    %1 = vector.load %arg1[%c56, %c0_1] : memref<168x128xf32, #tpu.memory_space<vmem>>, vector<16x8xf32>
    %c72 = arith.constant 72 : index
    %c0_2 = arith.constant 0 : index
    %2 = vector.load %arg1[%c72, %c0_2] : memref<168x128xf32, #tpu.memory_space<vmem>>, vector<1x8xf32>
    %c80 = arith.constant 80 : index
    %c0_3 = arith.constant 0 : index
    %3 = vector.load %arg1[%c80, %c0_3] : memref<168x128xf32, #tpu.memory_space<vmem>>, vector<64x8xf32>
    %c144 = arith.constant 144 : index
    %c0_4 = arith.constant 0 : index
    %4 = vector.load %arg1[%c144, %c0_4] : memref<168x128xf32, #tpu.memory_space<vmem>>, vector<1x8xf32>
    %c152 = arith.constant 152 : index
    %c0_5 = arith.constant 0 : index
    %5 = vector.load %arg1[%c152, %c0_5] : memref<168x128xf32, #tpu.memory_space<vmem>>, vector<4x8xf32>
    %c160 = arith.constant 160 : index
    %c0_6 = arith.constant 0 : index
    %6 = vector.load %arg1[%c160, %c0_6] : memref<168x128xf32, #tpu.memory_space<vmem>>, vector<1x8xf32>
    %c0_7 = arith.constant 0 : index
    %c0_8 = arith.constant 0 : index
    %7 = vector.load %arg0[%c0_7, %c0_8] : memref<16x1xi32, #tpu.memory_space<vmem>>, vector<16x1xi32>
    %8 = tpu.iota {dimensions = array<i32: 1>} : vector<16x56xi32>
    %9 = vector.broadcast %7 : vector<16x1xi32> to vector<16x56xi32>
    %10 = arith.cmpi eq, %8, %9 : vector<16x56xi32>
    %11 = arith.extui %10 : vector<16x56xi1> to vector<16x56xi32>
    %12 = arith.sitofp %11 : vector<16x56xi32> to vector<16x56xf32>
    %cst = arith.constant dense<0.000000e+00> : vector<16x16xf32>
    %13 = tpu.matmul %12, %0, %cst {dimension_numbers = #tpu.dot_dimension_numbers<[1], [0], [0], [1], [0, 0, 1, 1], [], []>} : vector<16x56xf32>, vector<56x16xf32>, vector<16x16xf32> -> vector<16x16xf32>
    %cst_9 = arith.constant dense<0.000000e+00> : vector<16x8xf32>
    %14 = tpu.matmul %13, %1, %cst_9 {dimension_numbers = #tpu.dot_dimension_numbers<[1], [0], [0], [1], [0, 0, 1, 1], [], []>} : vector<16x16xf32>, vector<16x8xf32>, vector<16x8xf32> -> vector<16x8xf32>
    %15 = vector.broadcast %2 : vector<1x8xf32> to vector<16x8xf32>
    %16 = arith.addf %14, %15 : vector<16x8xf32>
    %cst_10 = arith.constant 0.000000e+00 : f32
    %17 = vector.broadcast %cst_10 : f32 to vector<8x8xf32>
    %18 = vector.extract_strided_slice %16 {offsets = [0, 0], sizes = [8, 8], strides = [1, 1]} : vector<16x8xf32> to vector<8x8xf32>
    %19 = vector.extract_strided_slice %16 {offsets = [8, 0], sizes = [8, 8], strides = [1, 1]} : vector<16x8xf32> to vector<8x8xf32>
    %20 = tpu.concatenate %17, %18, %17, %19, %17 in 0 : vector<8x8xf32>, vector<8x8xf32>, vector<8x8xf32>, vector<8x8xf32>, vector<8x8xf32> -> vector<40x8xf32>
    %21 = vector.extract_strided_slice %20 {offsets = [0, 0], sizes = [33, 8], strides = [1, 1]} : vector<40x8xf32> to vector<33x8xf32>
    %22 = vector.extract_strided_slice %20 {offsets = [1, 0], sizes = [33, 8], strides = [1, 1]} : vector<40x8xf32> to vector<33x8xf32>
    %23 = vector.extract_strided_slice %20 {offsets = [2, 0], sizes = [33, 8], strides = [1, 1]} : vector<40x8xf32> to vector<33x8xf32>
    %24 = vector.extract_strided_slice %20 {offsets = [3, 0], sizes = [33, 8], strides = [1, 1]} : vector<40x8xf32> to vector<33x8xf32>
    %25 = vector.extract_strided_slice %20 {offsets = [4, 0], sizes = [33, 8], strides = [1, 1]} : vector<40x8xf32> to vector<33x8xf32>
    %26 = vector.extract_strided_slice %20 {offsets = [5, 0], sizes = [33, 8], strides = [1, 1]} : vector<40x8xf32> to vector<33x8xf32>
    %27 = vector.extract_strided_slice %20 {offsets = [6, 0], sizes = [33, 8], strides = [1, 1]} : vector<40x8xf32> to vector<33x8xf32>
    %28 = vector.extract_strided_slice %20 {offsets = [7, 0], sizes = [33, 8], strides = [1, 1]} : vector<40x8xf32> to vector<33x8xf32>
    %29 = tpu.concatenate %21, %22, %23, %24, %25, %26, %27, %28 in 1 : vector<33x8xf32>, vector<33x8xf32>, vector<33x8xf32>, vector<33x8xf32>, vector<33x8xf32>, vector<33x8xf32>, vector<33x8xf32>, vector<33x8xf32> -> vector<33x64xf32>
    %cst_11 = arith.constant dense<0.000000e+00> : vector<33x8xf32>
    %30 = tpu.matmul %29, %3, %cst_11 {dimension_numbers = #tpu.dot_dimension_numbers<[1], [0], [0], [1], [0, 0, 1, 1], [], []>} : vector<33x64xf32>, vector<64x8xf32>, vector<33x8xf32> -> vector<33x8xf32>
    %31 = vector.broadcast %4 : vector<1x8xf32> to vector<33x8xf32>
    %32 = arith.addf %30, %31 : vector<33x8xf32>
    %cst_12 = arith.constant 0.000000e+00 : f32
    %33 = vector.broadcast %cst_12 : f32 to vector<33x8xf32>
    %34 = arith.maximumf %32, %33 : vector<33x8xf32>
    %35 = vector.extract_strided_slice %34 {offsets = [0, 0], sizes = [33, 4], strides = [1, 1]} : vector<33x8xf32> to vector<33x4xf32>
    %36 = vector.extract_strided_slice %34 {offsets = [0, 4], sizes = [33, 4], strides = [1, 1]} : vector<33x8xf32> to vector<33x4xf32>
    %cst_13 = arith.constant dense<0xFF800000> : vector<33xf32>
    %37 = vector.multi_reduction <maximumf>, %36, %cst_13 [1] : vector<33x4xf32> to vector<33xf32>
    %38 = vector.shape_cast %37 : vector<33xf32> to vector<33x1xf32>
    %39 = vector.broadcast %38 : vector<33x1xf32> to vector<33x4xf32>
    %40 = arith.subf %36, %39 : vector<33x4xf32>
    %41 = math.exp %40 : vector<33x4xf32>
    %cst_14 = arith.constant dense<0.000000e+00> : vector<33xf32>
    %42 = vector.multi_reduction <add>, %41, %cst_14 [1] : vector<33x4xf32> to vector<33xf32>
    %43 = vector.shape_cast %42 : vector<33xf32> to vector<33x1xf32>
    %44 = tpu.reciprocal %43 {approx = true} : vector<33x1xf32> -> vector<33x1xf32>
    %45 = vector.broadcast %44 : vector<33x1xf32> to vector<33x4xf32>
    %46 = arith.mulf %41, %45 : vector<33x4xf32>
    %47 = arith.mulf %35, %46 : vector<33x4xf32>
    %cst_15 = arith.constant dense<0.000000e+00> : vector<33x8xf32>
    %48 = tpu.matmul %47, %5, %cst_15 {dimension_numbers = #tpu.dot_dimension_numbers<[1], [0], [0], [1], [0, 0, 1, 1], [], []>} : vector<33x4xf32>, vector<4x8xf32>, vector<33x8xf32> -> vector<33x8xf32>
    %49 = vector.broadcast %6 : vector<1x8xf32> to vector<33x8xf32>
    %50 = arith.addf %48, %49 : vector<33x8xf32>
    %51 = vector.extract_strided_slice %50 {offsets = [4, 0], sizes = [9, 8], strides = [1, 1]} : vector<33x8xf32> to vector<9x8xf32>
    %52 = vector.extract_strided_slice %50 {offsets = [20, 0], sizes = [9, 8], strides = [1, 1]} : vector<33x8xf32> to vector<9x8xf32>
    %cst_16 = arith.constant 0.000000e+00 : f32
    %53 = vector.broadcast %cst_16 : f32 to vector<7x8xf32>
    %54 = tpu.concatenate %17, %51, %53, %17, %52, %53, %17 in 0 : vector<8x8xf32>, vector<9x8xf32>, vector<7x8xf32>, vector<8x8xf32>, vector<9x8xf32>, vector<7x8xf32>, vector<8x8xf32> -> vector<56x8xf32>
    %55 = vector.extract_strided_slice %54 {offsets = [0, 0], sizes = [49, 8], strides = [1, 1]} : vector<56x8xf32> to vector<49x8xf32>
    %56 = vector.extract_strided_slice %54 {offsets = [1, 0], sizes = [49, 8], strides = [1, 1]} : vector<56x8xf32> to vector<49x8xf32>
    %57 = vector.extract_strided_slice %54 {offsets = [2, 0], sizes = [49, 8], strides = [1, 1]} : vector<56x8xf32> to vector<49x8xf32>
    %58 = vector.extract_strided_slice %54 {offsets = [3, 0], sizes = [49, 8], strides = [1, 1]} : vector<56x8xf32> to vector<49x8xf32>
    %59 = vector.extract_strided_slice %54 {offsets = [4, 0], sizes = [49, 8], strides = [1, 1]} : vector<56x8xf32> to vector<49x8xf32>
    %60 = vector.extract_strided_slice %54 {offsets = [5, 0], sizes = [49, 8], strides = [1, 1]} : vector<56x8xf32> to vector<49x8xf32>
    %61 = vector.extract_strided_slice %54 {offsets = [6, 0], sizes = [49, 8], strides = [1, 1]} : vector<56x8xf32> to vector<49x8xf32>
    %62 = vector.extract_strided_slice %54 {offsets = [7, 0], sizes = [49, 8], strides = [1, 1]} : vector<56x8xf32> to vector<49x8xf32>
    %63 = tpu.concatenate %55, %56, %57, %58, %59, %60, %61, %62 in 1 : vector<49x8xf32>, vector<49x8xf32>, vector<49x8xf32>, vector<49x8xf32>, vector<49x8xf32>, vector<49x8xf32>, vector<49x8xf32>, vector<49x8xf32> -> vector<49x64xf32>
    %cst_17 = arith.constant dense<0.000000e+00> : vector<49x8xf32>
    %64 = tpu.matmul %63, %3, %cst_17 {dimension_numbers = #tpu.dot_dimension_numbers<[1], [0], [0], [1], [0, 0, 1, 1], [], []>} : vector<49x64xf32>, vector<64x8xf32>, vector<49x8xf32> -> vector<49x8xf32>
    %65 = vector.broadcast %4 : vector<1x8xf32> to vector<49x8xf32>
    %66 = arith.addf %64, %65 : vector<49x8xf32>
    %cst_18 = arith.constant 0.000000e+00 : f32
    %67 = vector.broadcast %cst_18 : f32 to vector<49x8xf32>
    %68 = arith.maximumf %66, %67 : vector<49x8xf32>
    %69 = vector.extract_strided_slice %68 {offsets = [0, 0], sizes = [49, 4], strides = [1, 1]} : vector<49x8xf32> to vector<49x4xf32>
    %70 = vector.extract_strided_slice %68 {offsets = [0, 4], sizes = [49, 4], strides = [1, 1]} : vector<49x8xf32> to vector<49x4xf32>
    %cst_19 = arith.constant dense<0xFF800000> : vector<49xf32>
    %71 = vector.multi_reduction <maximumf>, %70, %cst_19 [1] : vector<49x4xf32> to vector<49xf32>
    %72 = vector.shape_cast %71 : vector<49xf32> to vector<49x1xf32>
    %73 = vector.broadcast %72 : vector<49x1xf32> to vector<49x4xf32>
    %74 = arith.subf %70, %73 : vector<49x4xf32>
    %75 = math.exp %74 : vector<49x4xf32>
    %cst_20 = arith.constant dense<0.000000e+00> : vector<49xf32>
    %76 = vector.multi_reduction <add>, %75, %cst_20 [1] : vector<49x4xf32> to vector<49xf32>
    %77 = vector.shape_cast %76 : vector<49xf32> to vector<49x1xf32>
    %78 = tpu.reciprocal %77 {approx = true} : vector<49x1xf32> -> vector<49x1xf32>
    %79 = vector.broadcast %78 : vector<49x1xf32> to vector<49x4xf32>
    %80 = arith.mulf %75, %79 : vector<49x4xf32>
    %81 = arith.mulf %69, %80 : vector<49x4xf32>
    %cst_21 = arith.constant dense<0.000000e+00> : vector<49x8xf32>
    %82 = tpu.matmul %81, %5, %cst_21 {dimension_numbers = #tpu.dot_dimension_numbers<[1], [0], [0], [1], [0, 0, 1, 1], [], []>} : vector<49x4xf32>, vector<4x8xf32>, vector<49x8xf32> -> vector<49x8xf32>
    %83 = vector.broadcast %6 : vector<1x8xf32> to vector<49x8xf32>
    %84 = arith.addf %82, %83 : vector<49x8xf32>
    %85 = vector.extract_strided_slice %84 {offsets = [4, 0], sizes = [10, 8], strides = [1, 1]} : vector<49x8xf32> to vector<10x8xf32>
    %86 = vector.extract_strided_slice %84 {offsets = [28, 0], sizes = [10, 8], strides = [1, 1]} : vector<49x8xf32> to vector<10x8xf32>
    %87 = vector.extract_strided_slice %81 {offsets = [4, 0], sizes = [10, 4], strides = [1, 1]} : vector<49x4xf32> to vector<10x4xf32>
    %88 = vector.extract_strided_slice %81 {offsets = [28, 0], sizes = [10, 4], strides = [1, 1]} : vector<49x4xf32> to vector<10x4xf32>
    %cst_22 = arith.constant dense<0.000000e+00> : vector<8xf32>
    %89 = vector.multi_reduction <add>, %85, %cst_22 [0] : vector<10x8xf32> to vector<8xf32>
    %90 = vector.shape_cast %89 : vector<8xf32> to vector<1x8xf32>
    %cst_23 = arith.constant dense<0.000000e+00> : vector<8xf32>
    %91 = vector.multi_reduction <add>, %86, %cst_23 [0] : vector<10x8xf32> to vector<8xf32>
    %92 = vector.shape_cast %91 : vector<8xf32> to vector<1x8xf32>
    %93 = tpu.concatenate %90, %92 in 0 : vector<1x8xf32>, vector<1x8xf32> -> vector<2x8xf32>
    %94 = tpu.concatenate %87, %88 in 0 : vector<10x4xf32>, vector<10x4xf32> -> vector<20x4xf32>
    %cst_24 = arith.constant 0.000000e+00 : f32
    %95 = vector.broadcast %cst_24 : f32 to vector<2x120xf32>
    %96 = tpu.concatenate %93, %95 in 1 : vector<2x8xf32>, vector<2x120xf32> -> vector<2x128xf32>
    %cst_25 = arith.constant 0.000000e+00 : f32
    %97 = vector.broadcast %cst_25 : f32 to vector<6x128xf32>
    %cst_26 = arith.constant 0.000000e+00 : f32
    %98 = vector.broadcast %cst_26 : f32 to vector<20x124xf32>
    %99 = tpu.concatenate %94, %98 in 1 : vector<20x4xf32>, vector<20x124xf32> -> vector<20x128xf32>
    %cst_27 = arith.constant 0.000000e+00 : f32
    %100 = vector.broadcast %cst_27 : f32 to vector<4x128xf32>
    %101 = tpu.concatenate %96, %97, %99, %100 in 0 : vector<2x128xf32>, vector<6x128xf32>, vector<20x128xf32>, vector<4x128xf32> -> vector<32x128xf32>
    %c0_28 = arith.constant 0 : index
    %c0_29 = arith.constant 0 : index
    %102 = vector.load %arg2[%c0_28, %c0_29] : memref<32x128xf32, #tpu.memory_space<vmem>>, vector<32x128xf32>
    tpu.vector_store %arg2[%c0_28, %c0_29], %101 {strides = array<i32>} : memref<32x128xf32, #tpu.memory_space<vmem>>, vector<32x128xf32>,
    return
  }
}

</mosaic_0001>

<bundles_post_ra>
// kernel: decoder_forward.1
= control target key start
LH: loop header
LB: loop body
LE: loop exit
PB: predicated region body
PF: predicated region fallthrough
CT: control target
= control target key end

     0   :  { %7 = vsyncpa [#allocation3], 0  ;;  %s1769_s9 = smov [#allocation2]   ;;  %s2539_s0 = inlined_call_operand.vmem [shape: s32[16,1], index: 0, kind: input, shape index: {}]   ;;  %s2540_s1 = inlined_call_operand.hbm [shape: f32[168,128], index: 1, kind: input, shape index: {}]   ;;  %s2541_s2 = inlined_call_operand.vmem [shape: f32[32,128], index: 2, kind: output, shape index: {}]  }
   0x1   :  { %s15_s10 = sshll.u32 %s1769_s9, 4  ;;  %s16_s10 = int_to_ptr.vmem [resolvable:$true] %s15_s10 }
   0x2   :  { %s1755_s11 = scalar_lea.vmem %s16_s10, 2688  ;;  %p1760_p1 = scmp.lt.s32.totalorder %s16_s10, %s16_s10 }
   0x3   :  { %p1756_p0 = scmp.ne.s32.totalorder %s16_s10, %s1755_s11  ;;  %p1761_p2 = scmp.lt.s32.totalorder %s1755_s11, %s1755_s11 }
   0x5   :  { %p1762_p3 = por %p1761_p2, %p1760_p1 }
   0x7   :  { %p1763_p4 = pnand %p1762_p3, %p1756_p0 }
   0x9   :  { %1766 = shalt.err (!%p1763_p4)
}
   0xa   :  { %s1770_s12 = smov 128   ;;  %s1771_s13 = smov 8  }
   0xb   :  { %21 = dma.hbm_to_vmem [thread:$0]  %s2540_s1, 2688, %s16_s10, [#allocation3], %s1770_s12, %s1770_s12, %s1771_s13  }
   0xc   :  { %1767 = dma.done.wait [#allocation3], 2688  }
   0xd   :  { %1768 = vsyncadd [#allocation3], 4294964608  ;;  %v1772_v0 = vmov 0   ;;  %v46_v1 = vld [vmem:[%s2539_s0] sm:$0xff]  ;;  %v31_v2 = vld [vmem:[#allocation2 + $0x30] sm:$0xff]  ;;  %v1773_v10 = vmov 0.0   ;;  %v48_v11 = vlaneseq }
   0xe   :  { %1698 = vset.pattern.permute.xlu0 %v1772_v0  ;;  %1553 = vmatprep.subr.mxu0 %v31_v2  ;;  %v30_v3 = vld [vmem:[#allocation2 + $0x28] sm:$0xff]  ;;  %v29_v5 = vld [vmem:[#allocation2 + $0x20] sm:$0xff]  ;;  %v28_v6 = vld [vmem:[#allocation2 + $0x18] sm:$0xff]  ;;  %vm2546_vm0 = vcmask 457728   ;;  %vm148_vm3 = vcmask 130048   ;;  %v1818_v24 = vrot.slane %v1773_v10, 2 }
   0xf   :  { %51 = vperm.xlu0 %1698, %v46_v1   ;;  %v47_v4 = vld [vmem:[%s2539_s0 + $0x8] sm:$0xff]  ;;  %1554 = vmatpush3.msra.mxu0 %v31_v2  ;;  %v27_v7 = vld [vmem:[#allocation2 + $0x10] sm:$0xff]  ;;  %v25_v9 = vld [vmem:[#allocation2] sm:$0xff]  ;;  %v49_v12 = vand.u32 127, %v48_v11  ;;  %v1821_v25 = vrot.slane %v1773_v10, 1  ;;  %vm256_vm4 = vcmask 1045504  }
  0x10   :  { %1555 = vmatprep.subr.mxu0 %v30_v3  ;;  %v26_v8 = vld [vmem:[#allocation2 + $0x8] sm:$0xff]  ;;  %v33_v17 = vld [vmem:[#allocation2 + $0x40] sm:$0xff]  ;;  %v32_v18 = vld [vmem:[#allocation2 + $0x38] sm:$0xff]  ;;  %vm233_vm5 = vcmask 1046528   ;;  %v1826_v28 = vrot.slane %v1773_v10, 4  ;;  %v1829_v29 = vrot.slane %v1773_v10, 3 }
  0x11   :  { %1556 = vmatpush3.msra.mxu0 %v30_v3  ;;  %1570 = vmatprep.subr.mxu1 %v33_v17  ;;  %v1467_v21 = vld [vmem:[#allocation2 + $0x48] ss:$0 sm:$0xff]  ;;  %s1774_s0 = smov 16   ;;  %vm302_vm6 = vcmask 1043456   ;;  %vm279_vm7 = vcmask 1044480   ;;  %v1848_v36 = vrot.slane %v1773_v10, 5 }
  0x12   :  { %1557 = vmatprep.subr.mxu0 %v29_v5  ;;  %1571 = vmatpush3.msra.mxu1 %v33_v17  ;;  %s1775_s1 = smov 32   ;;  %s1776_s20 = smov 24   ;;  %vm325_vm8 = vcmask 1042432   ;;  %v1854_v39 = vrot.slane %v1773_v10, 6  ;;  %v1865_v44 = vld [vmem:[#allocation2 + $0x88] sm:$0xff]  ;;  %vm2542_vm9 = vcmask 1041408  }
  0x13   :  { %54 = vperm.xlu0 %1698, %v47_v4   ;;  %1558 = vmatpush3.msra.mxu0 %v29_v5  ;;  %s1777_s21 = smov 40   ;;  %v1879_v49 = vld [vmem:[#allocation2 + $0x80] sm:$0xff]  ;;  %s1778_s22 = smov 48   ;;  %v1883_v50 = vld [vmem:[#allocation2 + $0x78] sm:$0xff]  ;;  %v1893_v54 = vld [vmem:[#allocation2 + $0x70] sm:$0xff]  ;;  %vm1779_vm10 = vmmov 0  }
  0x14   :  { %1559 = vmatprep.subr.mxu0 %v28_v6  ;;  %1572 = vmatprep.subr.mxu1 %v32_v18  ;;  %v1899_v55 = vld [vmem:[#allocation2 + $0x68] sm:$0xff]  ;;  %v1909_v59 = vld [vmem:[#allocation2 + $0x60] sm:$0xff]  ;;  %v1919_v63 = vld [vmem:[#allocation2 + $0x58] sm:$0xff]  ;;  %vm371_vm11 = vcmask 1040384   ;;  %s1780_s23 = smov 56   ;;  %vm394_vm12 = vcmask 64512  }
  0x15   :  { %1560 = vmatpush3.msra.mxu0 %v28_v6  ;;  %1573 = vmatpush3.msra.mxu1 %v32_v18  ;;  %v1927_v0 = vld [vmem:[#allocation2 + $0x50] sm:$0xff]  ;;  %vm405_vm13 = vcmask 195584   ;;  %vm411_vm14 = vcmask 261120   ;;  %vm417_vm15 = vcmask 326656   ;;  %s1781_s24 = smov 124  }
  0x16   :  { %1561 = vmatprep.subr.mxu0 %v27_v7  ;;  %1577 = vmatprep.subr.mxu1 %v1773_v10 }
  0x17   :  { %1562 = vmatpush3.msra.mxu0 %v27_v7  ;;  %v1949_v7 = vrot.slane %v1773_v10, 7 }
  0x18   :  { %1563 = vmatprep.subr.mxu0 %v26_v8 }
  0x19   :  { %1564 = vmatpush3.msra.mxu0 %v26_v8 }
  0x1a   :  { %1565 = vmatprep.subr.mxu0 %v25_v9 }
  0x1b   :  { %1566 = vmatpush3.msra.mxu0 %v25_v9 }
  0x1c   :  { %1608 = vmatprep.subr.mxu0 %v1773_v10 }
  0x8a   :  { %v52_v13 = vpop.permute.xlu0 %51 }
  0x8b   :  { %vm56_vm1 = vcmp.eq.s32.totalorder %v49_v12, %v52_v13 }
  0x8c   :  { %v1463_v14 = vsel %vm56_vm1, 1.0, %v1773_v10  ;;  %vm423_vm1 = vcmask 392192  }
  0x8d   :  { %1567 = vmatprep.mubr.msk.f32.mxu0 %vm2546_vm0, %v1463_v14 }
  0x8e   :  { %v55_v15 = vpop.permute.xlu0 %54 }
  0x8f   :  { %vm57_vm2 = vcmp.eq.s32.totalorder %v49_v12, %v55_v15 }
  0x90   :  { %v1464_v16 = vsel %vm57_vm2, 1.0, %v1773_v10  ;;  %vm2544_vm2 = vcmask 523264  }
  0x91   :  { %1568 = vmatmul.mubr.msk.f32.vlgmr.msra.gmra.mxu0 %vm2546_vm0, %v1464_v16 }
  0x92   :  { %1610 = vmatprep.mubr.msk.f32.mxu0 %vm1779_vm10, %v1773_v10 }
 0x151   :  { %v1569_v19 = vpop.f32.mrf.mxu0 }
 0x153   :  { %v135_v20 = vpop.f32.mrf.mxu0 }
 0x154   :  { %1574 = vmatprep.mubr.msk.f32.mxu1 %vm148_vm3, %v135_v20 }
 0x155   :  { %1575 = vmatmul.mubr.msk.f32.vlgmr.msra.gmra.mxu1 %vm148_vm3, %v1569_v19 }
 0x156   :  { %1578 = vmatpush3.msra.mxu1 %v1865_v44  ;;  %1593 = vmatprep.mubr.msk.f32.mxu1 %vm1779_vm10, %v1773_v10 }
 0x157   :  { %1579 = vmatprep.subr.mxu1 %v1773_v10 }
 0x158   :  { %1580 = vmatpush3.msra.mxu1 %v1879_v49 }
 0x159   :  { %1581 = vmatprep.subr.mxu1 %v1773_v10 }
 0x15a   :  { %1582 = vmatpush3.msra.mxu1 %v1883_v50 }
 0x15b   :  { %1583 = vmatprep.subr.mxu1 %v1773_v10 }
 0x15c   :  { %1584 = vmatpush3.msra.mxu1 %v1893_v54 }
 0x15d   :  { %1585 = vmatprep.subr.mxu1 %v1773_v10 }
 0x15e   :  { %1586 = vmatpush3.msra.mxu1 %v1899_v55 }
 0x15f   :  { %1587 = vmatprep.subr.mxu1 %v1773_v10 }
 0x160   :  { %1588 = vmatpush3.msra.mxu1 %v1909_v59 }
 0x161   :  { %1589 = vmatprep.subr.mxu1 %v1773_v10 }
 0x162   :  { %1590 = vmatpush3.msra.mxu1 %v1919_v63 }
 0x163   :  { %1591 = vmatprep.subr.mxu1 %v1773_v10 }
 0x164   :  { %1592 = vmatpush3.msra.mxu1 %v1927_v0 }
 0x165   :  { %1662 = vmatprep.subr.mxu1 %v1773_v10 }
 0x215   :  { %v1576_v22 = vpop.f32.mrf.mxu1 }
 0x216   :  { %v1815_v23 = vadd.f32 %v1576_v22, %v1467_v21 }
 0x217   :  { %v221_v38 = vpop.f32.mrf.mxu1 }
 0x218   :  { %v261_v26 = vrot.slane %v1815_v23, 2  ;;  %v238_v27 = vrot.slane %v1815_v23, 1  ;;  %v307_v32 = vrot.slane %v1815_v23, 4  ;;  %v284_v33 = vrot.slane %v1815_v23, 3 }
 0x219   :  { %v330_v37 = vrot.slane %v1815_v23, 5  ;;  %v1856_v40 = vadd.f32 %v1467_v21, %v221_v38  ;;  %v353_v43 = vrot.slane %v1815_v23, 6  ;;  %v376_v15 = vrot.slane %v1815_v23, 7 }
 0x21a   :  { %v262_v30 = vsel %vm256_vm4, %v1818_v24, %v261_v26  ;;  %v239_v31 = vsel %vm233_vm5, %v1821_v25, %v238_v27  ;;  %v308_v34 = vsel %vm302_vm6, %v1826_v28, %v307_v32  ;;  %v285_v35 = vsel %vm279_vm7, %v1829_v29, %v284_v33 }
 0x21b   :  { %268 = vrot.lane.b32.xlu1 %v262_v30, %s1774_s0  ;;  %245 = vrot.lane.b32.xlu0 %v239_v31, %s1771_s13  ;;  %v331_v41 = vsel %vm325_vm8, %v1848_v36, %v330_v37  ;;  %v240_v42 = vsel %vm233_vm5, %v238_v27, %v1821_v25  ;;  %v354_v45 = vsel %vm2542_vm9, %v1854_v39, %v353_v43  ;;  %v281_v47 = vrot.slane %v1856_v40, 3 }
 0x21c   :  { %v263_v46 = vsel %vm256_vm4, %v261_v26, %v1818_v24  ;;  %v235_v48 = vrot.slane %v1856_v40, 1  ;;  %v258_v53 = vrot.slane %v1856_v40, 2  ;;  %v304_v58 = vrot.slane %v1856_v40, 4 }
 0x21d   :  { %v282_v51 = vsel %vm279_vm7, %v1829_v29, %v281_v47  ;;  %v327_v62 = vrot.slane %v1856_v40, 5  ;;  %v283_v1 = vsel %vm279_vm7, %v281_v47, %v1829_v29  ;;  %v350_v3 = vrot.slane %v1856_v40, 6 }
 0x21e   :  { %v236_v52 = vsel %vm233_vm5, %v1821_v25, %v235_v48  ;;  %v237_v56 = vsel %vm233_vm5, %v235_v48, %v1821_v25  ;;  %v259_v57 = vsel %vm256_vm4, %v1818_v24, %v258_v53  ;;  %v260_v60 = vsel %vm256_vm4, %v258_v53, %v1818_v24 }
 0x21f   :  { %314 = vrot.lane.b32.xlu1 %v308_v34, %s1775_s1  ;;  %291 = vrot.lane.b32.xlu0 %v285_v35, %s1776_s20  ;;  %v305_v61 = vsel %vm302_vm6, %v1826_v28, %v304_v58  ;;  %v328_v2 = vsel %vm325_vm8, %v1848_v36, %v327_v62  ;;  %v306_v4 = vsel %vm302_vm6, %v304_v58, %v1826_v28  ;;  %v373_v6 = vrot.slane %v1856_v40, 7 }
 0x220   :  { %v351_v5 = vsel %vm2542_vm9, %v1854_v39, %v350_v3  ;;  %v352_v8 = vsel %vm2542_vm9, %v350_v3, %v1854_v39  ;;  %v286_v11 = vsel %vm279_vm7, %v284_v33, %v1829_v29  ;;  %v329_v12 = vsel %vm325_vm8, %v327_v62, %v1848_v36 }
 0x221   :  { %v374_v9 = vsel %vm371_vm11, %v1949_v7, %v373_v6  ;;  %v309_v13 = vsel %vm302_vm6, %v307_v32, %v1826_v28  ;;  %v375_v14 = vsel %vm371_vm11, %v373_v6, %v1949_v7  ;;  %v355_v16 = vsel %vm2542_vm9, %v353_v43, %v1854_v39 }
 0x222   :  { %v377_v17 = vsel %vm371_vm11, %v1949_v7, %v376_v15  ;;  %v332_v18 = vsel %vm325_vm8, %v330_v37, %v1848_v36  ;;  %v378_v19 = vsel %vm371_vm11, %v376_v15, %v1949_v7  ;;  %vm2543_vm9 = vcmask 64544  }
 0x223   :  { %337 = vrot.lane.b32.xlu1 %v331_v41, %s1777_s21  ;;  %247 = vrot.lane.b32.xlu0 %v240_v42, %s1771_s13 }
 0x227   :  { %360 = vrot.lane.b32.xlu1 %v354_v45, %s1778_s22  ;;  %270 = vrot.lane.b32.xlu0 %v263_v46, %s1774_s0 }
 0x22b   :  { %287 = vrot.lane.b32.xlu0 %v282_v51, %s1776_s20  ;;  %241 = vrot.lane.b32.xlu1 %v236_v52, %s1771_s13 }
 0x22f   :  { %243 = vrot.lane.b32.xlu0 %v237_v56, %s1771_s13  ;;  %264 = vrot.lane.b32.xlu1 %v259_v57, %s1774_s0 }
 0x233   :  { %266 = vrot.lane.b32.xlu0 %v260_v60, %s1774_s0  ;;  %310 = vrot.lane.b32.xlu1 %v305_v61, %s1775_s1 }
 0x237   :  { %289 = vrot.lane.b32.xlu0 %v283_v1, %s1776_s20  ;;  %333 = vrot.lane.b32.xlu1 %v328_v2, %s1777_s21 }
 0x23b   :  { %312 = vrot.lane.b32.xlu0 %v306_v4, %s1775_s1  ;;  %356 = vrot.lane.b32.xlu1 %v351_v5, %s1778_s22 }
 0x23f   :  { %358 = vrot.lane.b32.xlu0 %v352_v8, %s1778_s22  ;;  %379 = vrot.lane.b32.xlu1 %v374_v9, %s1780_s23 }
 0x243   :  { %293 = vrot.lane.b32.xlu0 %v286_v11, %s1776_s20  ;;  %335 = vrot.lane.b32.xlu1 %v329_v12, %s1777_s21 }
 0x247   :  { %316 = vrot.lane.b32.xlu0 %v309_v13, %s1775_s1  ;;  %381 = vrot.lane.b32.xlu1 %v375_v14, %s1780_s23 }
 0x24b   :  { %362 = vrot.lane.b32.xlu0 %v355_v16, %s1778_s22  ;;  %383 = vrot.lane.b32.xlu1 %v377_v17, %s1780_s23 }
 0x24f   :  { %339 = vrot.lane.b32.xlu1 %v332_v18, %s1777_s21  ;;  %295 = vrot.lane.b32.xlu0 %v1829_v29, %s1776_s20 }
 0x253   :  { %385 = vrot.lane.b32.xlu1 %v378_v19, %s1780_s23 }
 0x257   :  { %249 = vrot.lane.b32.xlu1 %v1821_v25, %s1771_s13 }
 0x25b   :  { %272 = vrot.lane.b32.xlu1 %v1818_v24, %s1774_s0 }
 0x28d   :  { %v269_v20 = vpop.permute.xlu1 %268  ;;  %v246_v21 = vpop.permute.xlu0 %245 }
 0x28e   :  { %v397_v1 = vsel %vm394_vm12, 0.0, %v246_v21 }
 0x291   :  { %v315_v22 = vpop.permute.xlu1 %314  ;;  %v292_v26 = vpop.permute.xlu0 %291 }
 0x295   :  { %v338_v27 = vpop.permute.xlu1 %337  ;;  %v248_v30 = vpop.permute.xlu0 %247 }
 0x296   :  { %v398_v17 = vsel %vm394_vm12, %v1815_v23, %v248_v30 }
 0x299   :  { %v361_v31 = vpop.permute.xlu1 %360  ;;  %v271_v32 = vpop.permute.xlu0 %270 }
 0x29d   :  { %v288_v33 = vpop.permute.xlu0 %287  ;;  %v242_v34 = vpop.permute.xlu1 %241 }
 0x29e   :  { %v395_v45 = vsel %vm394_vm12, 0.0, %v242_v34 }
 0x2a1   :  { %v244_v35 = vpop.permute.xlu0 %243  ;;  %v265_v37 = vpop.permute.xlu1 %264 }
 0x2a2   :  { %v400_v46 = vsel %vm148_vm3, %v395_v45, %v265_v37  ;;  %v396_v58 = vsel %vm394_vm12, %v1856_v40, %v244_v35  ;;  %v402_v40 = vsel %vm148_vm3, %v397_v1, %v269_v20  ;;  %v403_v20 = vsel %vm148_vm3, %v398_v17, %v271_v32  ;;  %v2038_v32 = vld [vmem:[#allocation2 + $0x90] ss:$0 sm:$0xff] }
 0x2a3   :  { %v406_v51 = vsel %vm405_vm13, %v400_v46, %v288_v33  ;;  %v408_v6 = vsel %vm405_vm13, %v402_v40, %v292_v26 }
 0x2a4   :  { %v414_v13 = vsel %vm411_vm14, %v408_v6, %v315_v22 }
 0x2a5   :  { %v267_v38 = vpop.permute.xlu0 %266  ;;  %v311_v41 = vpop.permute.xlu1 %310  ;;  %v420_v14 = vsel %vm417_vm15, %v414_v13, %v338_v27 }
 0x2a6   :  { %v412_v52 = vsel %vm411_vm14, %v406_v51, %v311_v41  ;;  %v401_v62 = vsel %vm148_vm3, %v396_v58, %v267_v38  ;;  %v426_v15 = vsel %vm423_vm1, %v420_v14, %v361_v31 }
 0x2a9   :  { %v290_v42 = vpop.permute.xlu0 %289  ;;  %v334_v43 = vpop.permute.xlu1 %333 }
 0x2aa   :  { %v418_v53 = vsel %vm417_vm15, %v412_v52, %v334_v43  ;;  %v407_v2 = vsel %vm405_vm13, %v401_v62, %v290_v42 }
 0x2ad   :  { %v313_v47 = vpop.permute.xlu0 %312  ;;  %v357_v48 = vpop.permute.xlu1 %356 }
 0x2ae   :  { %v424_v56 = vsel %vm423_vm1, %v418_v53, %v357_v48  ;;  %v413_v3 = vsel %vm411_vm14, %v407_v2, %v313_v47 }
 0x2b1   :  { %v380_v57 = vpop.permute.xlu1 %379  ;;  %v359_v60 = vpop.permute.xlu0 %358 }
 0x2b2   :  { %v429_v61 = vsel %vm2546_vm0, %v424_v56, %v380_v57 }
 0x2b3   :  { %1594 = vmatmul.mubr.msk.f32.vlgmr.msra.gmra.mxu1 %vm2544_vm2, %v429_v61 }
 0x2b4   :  { %1596 = vmatprep.mubr.msk.f32.mxu1 %vm1779_vm10, %v1773_v10 }
 0x2b5   :  { %v336_v4 = vpop.permute.xlu1 %335  ;;  %v294_v8 = vpop.permute.xlu0 %293 }
 0x2b6   :  { %v419_v5 = vsel %vm417_vm15, %v413_v3, %v336_v4  ;;  %v409_v21 = vsel %vm405_vm13, %v403_v20, %v294_v8 }
 0x2b7   :  { %v425_v9 = vsel %vm423_vm1, %v419_v5, %v359_v60 }
 0x2b9   :  { %v382_v11 = vpop.permute.xlu1 %381  ;;  %v317_v18 = vpop.permute.xlu0 %316 }
 0x2ba   :  { %v430_v12 = vsel %vm2546_vm0, %v425_v9, %v382_v11  ;;  %v415_v22 = vsel %vm411_vm14, %v409_v21, %v317_v18 }
 0x2bb   :  { %1597 = vmatmul.mubr.msk.f32.gmra.mxu1 %vm2544_vm2, %v430_v12 }
 0x2bc   :  { %1599 = vmatprep.mubr.msk.f32.mxu1 %vm1779_vm10, %v1773_v10 }
 0x2bd   :  { %v384_v16 = vpop.permute.xlu1 %383  ;;  %v363_v31 = vpop.permute.xlu0 %362 }
 0x2be   :  { %v431_v19 = vsel %vm2546_vm0, %v426_v15, %v384_v16 }
 0x2bf   :  { %1600 = vmatmul.mubr.msk.f32.gmra.mxu1 %vm2544_vm2, %v431_v19 }
 0x2c0   :  { %1602 = vmatprep.mubr.msk.f32.mxu1 %vm1779_vm10, %v1773_v10 }
 0x2c1   :  { %v340_v26 = vpop.permute.xlu1 %339  ;;  %v296_v1 = vpop.permute.xlu0 %295 }
 0x2c2   :  { %v421_v27 = vsel %vm417_vm15, %v415_v22, %v340_v26 }
 0x2c3   :  { %v427_v23 = vsel %vm423_vm1, %v421_v27, %v363_v31 }
 0x2c5   :  { %v386_v30 = vpop.permute.xlu1 %385 }
 0x2c6   :  { %v432_v33 = vsel %vm2546_vm0, %v427_v23, %v386_v30 }
 0x2c7   :  { %1603 = vmatmul.mubr.msk.f32.gmra.mxu1 %vm2544_vm2, %v432_v33 }
 0x2c8   :  { %1605 = vmatprep.mubr.msk.f32.mxu1 %vm1779_vm10, %v1773_v10 }
 0x2c9   :  { %v250_v2 = vpop.permute.xlu1 %249 }
 0x2ca   :  { %v399_v8 = vsel %vm394_vm12, 0.0, %v250_v2 }
 0x2cd   :  { %v273_v40 = vpop.permute.xlu1 %272 }
 0x2ce   :  { %v404_v12 = vsel %vm148_vm3, %v399_v8, %v273_v40 }
 0x2cf   :  { %v410_v15 = vsel %vm405_vm13, %v404_v12, %v296_v1 }
 0x373   :  { %v520_v34 = vpop.f32.mrf.mxu1 }
 0x374   :  { %v521_v35 = vadd.f32 %v2038_v32, %v520_v34 }
 0x375   :  { %v1595_v37 = vpop.f32.mrf.mxu1 }
 0x376   :  { %v2041_v38 = vmax.f32 %v521_v35, 0.0 }
 0x378   :  { %v550_v41 = vsel %vm2543_vm9, %v2041_v38, -inf }
 0x379   :  { %551 = vmax.xlane.f32.xlu0 %v550_v41 }
 0x37b   :  { %v525_v42 = vpop.f32.mrf.mxu1 }
 0x37c   :  { %v526_v43 = vadd.f32 %v2038_v32, %v525_v42 }
 0x37d   :  { %v1598_v45 = vpop.f32.mrf.mxu1 }
 0x37e   :  { %v2046_v46 = vmax.f32 %v526_v43, 0.0 }
 0x37f   :  { %v530_v47 = vpop.f32.mrf.mxu1 }
 0x380   :  { %v553_v48 = vsel %vm2543_vm9, %v2046_v46, -inf  ;;  %v531_v56 = vadd.f32 %v2038_v32, %v530_v47 }
 0x381   :  { %554 = vmax.xlane.f32.xlu1 %v553_v48  ;;  %v1601_v51 = vpop.f32.mrf.mxu1 }
 0x382   :  { %v2060_v58 = vmax.f32 %v531_v56, 0.0 }
 0x384   :  { %v556_v61 = vsel %vm2543_vm9, %v2060_v58, -inf }
 0x387   :  { %v535_v52 = vpop.f32.mrf.mxu1 }
 0x388   :  { %v536_v57 = vadd.f32 %v2038_v32, %v535_v52 }
 0x389   :  { %v1604_v53 = vpop.f32.mrf.mxu1 }
 0x38a   :  { %v2062_v60 = vmax.f32 %v536_v57, 0.0 }
 0x38c   :  { %v559_v62 = vsel %vm2543_vm9, %v2062_v60, -inf  ;;  %vm601_vm9 = vcmask 31744  }
 0x38f   :  { %341 = vrot.lane.b32.xlu0 %v1848_v36, %s1777_s21 }
 0x392   :  { %318 = vrot.lane.b32.xlu1 %v1826_v28, %s1775_s1 }
 0x393   :  { %364 = vrot.lane.b32.xlu0 %v1854_v39, %s1778_s22 }
 0x397   :  { %387 = vrot.lane.b32.xlu0 %v1949_v7, %s1780_s23 }
 0x3b6   :  { %557 = vmax.xlane.f32.xlu1 %v556_v61  ;;  %560 = vmax.xlane.f32.xlu0 %v559_v62  ;;  %v44_v61 = vld [vmem:[#allocation2 + $0x98] sm:$0xf] }
 0x3b7   :  { %1609 = vmatpush3.msk.msra.mxu0 %vm302_vm6, %v44_v61  ;;  %1663 = vmatpush3.msk.msra.mxu1 %vm302_vm6, %v44_v61 }
 0x3b8   :  { %1625 = vmatprep.subr.mxu0 %v1773_v10 }
 0x402   :  { %v552_v3 = vpop.xlane.xlu0 %551 }
 0x403   :  { %v566_v4 = vsub.f32 %v2041_v38, %v552_v3 }
 0x405   :  { %v571_v5 = vmul.f32 1.442695, %v566_v4 }
 0x406   :  { %v342_v6 = vpop.permute.xlu0 %341 }
 0x407   :  { %1699 = vpow2.f32 %v571_v5 }
 0x40a   :  { %v555_v9 = vpop.xlane.xlu1 %554  ;;  %v365_v11 = vpop.permute.xlu0 %364 }
 0x40b   :  { %v567_v13 = vsub.f32 %v2046_v46, %v555_v9 }
 0x40d   :  { %v573_v14 = vmul.f32 1.442695, %v567_v13 }
 0x40e   :  { %v319_v16 = vpop.permute.xlu1 %318  ;;  %v388_v18 = vpop.permute.xlu0 %387 }
 0x40f   :  { %1701 = vpow2.f32 %v573_v14  ;;  %v416_v17 = vsel %vm411_vm14, %v410_v15, %v319_v16 }
 0x410   :  { %v422_v19 = vsel %vm417_vm15, %v416_v17, %v342_v6 }
 0x411   :  { %v428_v20 = vsel %vm423_vm1, %v422_v19, %v365_v11 }
 0x412   :  { %v2077_v21 = vsel %vm2546_vm0, %v428_v20, %v388_v18  ;;  %vm2547_vm0 = vcmask 24576  }
 0x413   :  { %1606 = vmatmul.mubr.msk.f32.gmra.mxu1 %vm2544_vm2, %v2077_v21  ;;  %vm2545_vm2 = vcmask 57376  }
 0x414   :  { %v1700_v22 = vpop.eup %1699  ;;  %1664 = vmatprep.mubr.msk.f32.mxu1 %vm1779_vm10, %v1773_v10 }
 0x415   :  { %586 = vrot.lane.b32.xlu0 %v1700_v22, %s1781_s24 }
 0x41c   :  { %v1702_v26 = vpop.eup %1701 }
 0x41d   :  { %588 = vrot.lane.b32.xlu1 %v1702_v26, %s1781_s24 }
 0x43f   :  { %v561_v27 = vpop.xlane.xlu0 %560  ;;  %v558_v31 = vpop.xlane.xlu1 %557 }
 0x440   :  { %v569_v23 = vsub.f32 %v2062_v60, %v561_v27  ;;  %v568_v30 = vsub.f32 %v2060_v58, %v558_v31 }
 0x442   :  { %v577_v33 = vmul.f32 1.442695, %v569_v23  ;;  %v575_v34 = vmul.f32 1.442695, %v568_v30 }
 0x444   :  { %1703 = vpow2.f32 %v577_v33 }
 0x445   :  { %1705 = vpow2.f32 %v575_v34 }
 0x451   :  { %v1704_v35 = vpop.eup %1703 }
 0x452   :  { %v1706_v37 = vpop.eup %1705  ;;  %592 = vrot.lane.b32.xlu0 %v1704_v35, %s1781_s24 }
 0x453   :  { %590 = vrot.lane.b32.xlu1 %v1706_v37, %s1781_s24 }
 0x487   :  { %v587_v41 = vpop.permute.xlu0 %586 }
 0x488   :  { %v602_v42 = vsel %vm601_vm9, %v587_v41, 0.0 }
 0x489   :  { %603 = vadd.xlane.f32.xlu1 %v602_v42 }
 0x48f   :  { %v589_v43 = vpop.permute.xlu1 %588 }
 0x490   :  { %v605_v45 = vsel %vm601_vm9, %v589_v43, 0.0 }
 0x491   :  { %606 = vadd.xlane.f32.xlu0 %v605_v45 }
 0x4c4   :  { %v593_v47 = vpop.permute.xlu0 %592 }
 0x4c5   :  { %v591_v48 = vpop.permute.xlu1 %590  ;;  %v611_v51 = vsel %vm601_vm9, %v593_v47, 0.0 }
 0x4c6   :  { %612 = vadd.xlane.f32.xlu1 %v611_v51  ;;  %v608_v52 = vsel %vm601_vm9, %v591_v48, 0.0 }
 0x4c7   :  { %609 = vadd.xlane.f32.xlu0 %v608_v52 }
 0x4d3   :  { %v540_v53 = vpop.f32.mrf.mxu1 }
 0x4d4   :  { %v541_v12 = vadd.f32 %v2038_v32, %v540_v53 }
 0x4d5   :  { %v1607_v56 = vpop.f32.mrf.mxu1 }
 0x4d6   :  { %v2101_v13 = vmax.f32 %v541_v12, 0.0 }
 0x4d8   :  { %v563_v14 = vsel %vm2545_vm2, %v2101_v13, -inf  ;;  %vm2548_vm2 = vcmask 1041408  }
 0x512   :  { %v604_v57 = vpop.xlane.xlu1 %603 }
 0x513   :  { %1707 = vrcp.f32 %v604_v57 }
 0x51a   :  { %v607_v62 = vpop.xlane.xlu0 %606 }
 0x51b   :  { %1709 = vrcp.f32 %v607_v62 }
 0x520   :  { %v1708_v1 = vpop.eup %1707 }
 0x521   :  { %v623_v2 = vmul.f32 %v1708_v1, %v1700_v22 }
 0x523   :  { %633 = vrot.lane.b32.xlu0 %v623_v2, %s1781_s24 }
 0x528   :  { %v1710_v3 = vpop.eup %1709 }
 0x529   :  { %v624_v4 = vmul.f32 %v1710_v3, %v1702_v26 }
 0x52b   :  { %635 = vrot.lane.b32.xlu1 %v624_v4, %s1781_s24 }
 0x54f   :  { %v613_v5 = vpop.xlane.xlu1 %612 }
 0x550   :  { %v610_v40 = vpop.xlane.xlu0 %609  ;;  %1711 = vrcp.f32 %v613_v5 }
 0x551   :  { %1713 = vrcp.f32 %v610_v40 }
 0x55d   :  { %v1712_v6 = vpop.eup %1711 }
 0x55e   :  { %v1714_v8 = vpop.eup %1713  ;;  %v626_v9 = vmul.f32 %v1712_v6, %v1704_v35 }
 0x55f   :  { %v625_v11 = vmul.f32 %v1714_v8, %v1706_v37 }
 0x560   :  { %639 = vrot.lane.b32.xlu0 %v626_v9, %s1781_s24 }
 0x561   :  { %637 = vrot.lane.b32.xlu1 %v625_v11, %s1781_s24 }
 0x585   :  { %564 = vmax.xlane.f32.xlu1 %v563_v14 }
 0x595   :  { %v634_v15 = vpop.permute.xlu0 %633 }
 0x596   :  { %v648_v16 = vmul.f32 %v634_v15, %v2041_v38 }
 0x598   :  { %1611 = vmatmul.mubr.msk.f32.vlgmr.msra.gmra.mxu0 %vm601_vm9, %v648_v16 }
 0x599   :  { %1613 = vmatprep.mubr.msk.f32.mxu0 %vm1779_vm10, %v1773_v10  ;;  %1626 = vmatpush3.msra.mxu0 %v1865_v44 }
 0x59a   :  { %1627 = vmatprep.subr.mxu0 %v1773_v10 }
 0x59b   :  { %1628 = vmatpush3.msra.mxu0 %v1879_v49 }
 0x59c   :  { %1629 = vmatprep.subr.mxu0 %v1773_v10 }
 0x59d   :  { %v636_v17 = vpop.permute.xlu1 %635  ;;  %1630 = vmatpush3.msra.mxu0 %v1883_v50 }
 0x59e   :  { %v649_v18 = vmul.f32 %v636_v17, %v2046_v46  ;;  %1631 = vmatprep.subr.mxu0 %v1773_v10 }
 0x59f   :  { %1632 = vmatpush3.msra.mxu0 %v1893_v54 }
 0x5a0   :  { %1614 = vmatmul.mubr.msk.f32.gmra.mxu0 %vm601_vm9, %v649_v18  ;;  %1633 = vmatprep.subr.mxu0 %v1773_v10 }
 0x5a1   :  { %1616 = vmatprep.mubr.msk.f32.mxu0 %vm1779_vm10, %v1773_v10  ;;  %1634 = vmatpush3.msra.mxu0 %v1899_v55 }
 0x5a2   :  { %1635 = vmatprep.subr.mxu0 %v1773_v10 }
 0x5a3   :  { %1636 = vmatpush3.msra.mxu0 %v1909_v59 }
 0x5a4   :  { %1637 = vmatprep.subr.mxu0 %v1773_v10 }
 0x5a5   :  { %1638 = vmatpush3.msra.mxu0 %v1919_v63 }
 0x5a6   :  { %1639 = vmatprep.subr.mxu0 %v1773_v10 }
 0x5a7   :  { %1640 = vmatpush3.msra.mxu0 %v1927_v0 }
 0x5d2   :  { %v640_v50 = vpop.permute.xlu0 %639 }
 0x5d3   :  { %v638_v44 = vpop.permute.xlu1 %637  ;;  %v651_v54 = vmul.f32 %v640_v50, %v2062_v60 }
 0x5d4   :  { %v650_v49 = vmul.f32 %v638_v44, %v2060_v58  ;;  %v2141_v58 = vld [vmem:[#allocation2 + $0xa0] ss:$0 sm:$0xff] }
 0x5d6   :  { %1617 = vmatmul.mubr.msk.f32.gmra.mxu0 %vm601_vm9, %v650_v49 }
 0x5d7   :  { %1619 = vmatprep.mubr.msk.f32.mxu0 %vm1779_vm10, %v1773_v10 }
 0x5da   :  { %1620 = vmatmul.mubr.msk.f32.gmra.mxu0 %vm601_vm9, %v651_v54 }
 0x5db   :  { %1622 = vmatprep.mubr.msk.f32.mxu0 %vm1779_vm10, %v1773_v10 }
 0x60e   :  { %v565_v55 = vpop.xlane.xlu1 %564 }
 0x60f   :  { %v570_v59 = vsub.f32 %v2101_v13, %v565_v55 }
 0x611   :  { %v579_v63 = vmul.f32 1.442695, %v570_v59 }
 0x613   :  { %1715 = vpow2.f32 %v579_v63 }
 0x620   :  { %v2137_v0 = vpop.eup %1715 }
 0x621   :  { %594 = vrot.lane.b32.xlu0 %v2137_v0, %s1781_s24 }
 0x658   :  { %v741_v38 = vpop.f32.mrf.mxu0 }
 0x659   :  { %v742_v60 = vadd.f32 %v2141_v58, %v741_v38 }
 0x65a   :  { %v1612_v46 = vpop.f32.mrf.mxu0 }
 0x65b   :  { %v766_v26 = vrot.slane %v742_v60, 4 }
 0x660   :  { %v746_v19 = vpop.f32.mrf.mxu0 }
 0x661   :  { %v747_v20 = vadd.f32 %v2141_v58, %v746_v19 }
 0x662   :  { %v1615_v22 = vpop.f32.mrf.mxu0 }
 0x663   :  { %v767_v27 = vrot.slane %v747_v20, 4 }
 0x665   :  { %v2146_v31 = vsel %vm302_vm6, %v766_v26, %v767_v27  ;;  %v2157_v37 = vsel %vm371_vm11, %v767_v27, 0.0 }
 0x666   :  { %v782_v23 = vrot.slane %v2146_v31, 1  ;;  %v810_v33 = vrot.slane %v2146_v31, 2  ;;  %v838_v35 = vrot.slane %v2146_v31, 3  ;;  %v784_v42 = vrot.slane %v2157_v37, 1 }
 0x667   :  { %v812_v45 = vrot.slane %v2157_v37, 2  ;;  %v840_v48 = vrot.slane %v2157_v37, 3  ;;  %v866_v52 = vrot.slane %v2146_v31, 4  ;;  %v868_v53 = vrot.slane %v2157_v37, 4 }
 0x668   :  { %v783_v30 = vsel %vm233_vm5, %v1821_v25, %v782_v23  ;;  %v811_v34 = vsel %vm256_vm4, %v1818_v24, %v810_v33  ;;  %v839_v41 = vsel %vm279_vm7, %v1829_v29, %v838_v35  ;;  %v785_v43 = vsel %vm233_vm5, %v782_v23, %v784_v42 }
 0x669   :  { %792 = vrot.lane.b32.xlu1 %v783_v30, %s1771_s13  ;;  %v813_v47 = vsel %vm256_vm4, %v810_v33, %v812_v45  ;;  %v841_v51 = vsel %vm279_vm7, %v838_v35, %v840_v48  ;;  %v869_v56 = vsel %vm302_vm6, %v866_v52, %v868_v53  ;;  %v894_v57 = vrot.slane %v2146_v31, 5 }
 0x66a   :  { %v896_v61 = vrot.slane %v2157_v37, 5  ;;  %v922_v1 = vrot.slane %v2146_v31, 6  ;;  %v924_v2 = vrot.slane %v2157_v37, 6  ;;  %v950_v4 = vrot.slane %v2146_v31, 7 }
 0x66b   :  { %v952_v5 = vrot.slane %v2157_v37, 7 }
 0x66c   :  { %v897_v62 = vsel %vm325_vm8, %v894_v57, %v896_v61  ;;  %v925_v3 = vsel %vm2548_vm2, %v922_v1, %v924_v2 }
 0x66d   :  { %820 = vrot.lane.b32.xlu1 %v811_v34, %s1774_s0  ;;  %v953_v40 = vsel %vm371_vm11, %v950_v4, %v952_v5 }
 0x671   :  { %848 = vrot.lane.b32.xlu1 %v839_v41, %s1776_s20 }
 0x675   :  { %794 = vrot.lane.b32.xlu1 %v785_v43, %s1771_s13 }
 0x679   :  { %822 = vrot.lane.b32.xlu1 %v813_v47, %s1774_s0 }
 0x67d   :  { %850 = vrot.lane.b32.xlu1 %v841_v51, %s1776_s20 }
 0x681   :  { %878 = vrot.lane.b32.xlu1 %v869_v56, %s1775_s1 }
 0x685   :  { %906 = vrot.lane.b32.xlu1 %v897_v62, %s1777_s21 }
 0x689   :  { %934 = vrot.lane.b32.xlu1 %v925_v3, %s1778_s22 }
 0x68d   :  { %962 = vrot.lane.b32.xlu1 %v953_v40, %s1780_s23 }
 0x693   :  { %v595_v6 = vpop.permute.xlu0 %594 }
 0x694   :  { %v615_v8 = vsel %vm2547_vm0, %v595_v6, 0.0  ;;  %vm2549_vm0 = vmmov %vm2548_vm2 }
 0x695   :  { %616 = vadd.xlane.f32.xlu0 %v615_v8 }
 0x696   :  { %v751_v9 = vpop.f32.mrf.mxu0 }
 0x697   :  { %v752_v12 = vadd.f32 %v2141_v58, %v751_v9 }
 0x698   :  { %v1618_v11 = vpop.f32.mrf.mxu0 }
 0x699   :  { %v773_v17 = vrot.slane %v752_v12, 4  ;;  %v867_v12 = vsel %vm302_vm6, %v1826_v28, %v866_v52  ;;  %v951_v52 = vsel %vm371_vm11, %v1949_v7, %v950_v4  ;;  %v842_v4 = vsel %vm279_vm7, %v840_v48, %v1829_v29 }
 0x69a   :  { %v756_v14 = vpop.f32.mrf.mxu0 }
 0x69b   :  { %v757_v15 = vadd.f32 %v2141_v58, %v756_v14  ;;  %v895_v14 = vsel %vm325_vm8, %v1848_v36, %v894_v57  ;;  %v786_v57 = vsel %vm233_vm5, %v784_v42, %v1821_v25  ;;  %v870_v42 = vsel %vm302_vm6, %v868_v53, %v1826_v28 }
 0x69c   :  { %v1621_v16 = vpop.f32.mrf.mxu0 }
 0x69d   :  { %v774_v18 = vrot.slane %v757_v15, 4 }
 0x69f   :  { %v2214_v44 = vsel %vm302_vm6, %v773_v17, %v774_v18  ;;  %v2218_v50 = vsel %vm371_vm11, %v774_v18, 0.0 }
 0x6a0   :  { %v787_v49 = vrot.slane %v2214_v44, 1  ;;  %v815_v55 = vrot.slane %v2214_v44, 2  ;;  %v871_v59 = vrot.slane %v2214_v44, 4  ;;  %v927_v63 = vrot.slane %v2214_v44, 6 }
 0x6a1   :  { %v817_v38 = vrot.slane %v2218_v50, 2  ;;  %v873_v46 = vrot.slane %v2218_v50, 4  ;;  %v929_v60 = vrot.slane %v2218_v50, 6  ;;  %v843_v20 = vrot.slane %v2214_v44, 3 }
 0x6a2   :  { %v788_v54 = vsel %vm233_vm5, %v1821_v25, %v787_v49  ;;  %v816_v19 = vsel %vm256_vm4, %v1818_v24, %v815_v55  ;;  %v872_v30 = vsel %vm302_vm6, %v1826_v28, %v871_v59  ;;  %v899_v33 = vrot.slane %v2214_v44, 5 }
 0x6a3   :  { %798 = vrot.lane.b32.xlu1 %v788_v54, %s1771_s13  ;;  %v818_v22 = vsel %vm256_vm4, %v815_v55, %v817_v38  ;;  %v874_v26 = vsel %vm302_vm6, %v871_v59, %v873_v46  ;;  %v930_v27 = vsel %vm2548_vm2, %v927_v63, %v929_v60  ;;  %v844_v23 = vsel %vm279_vm7, %v1829_v29, %v843_v20  ;;  %vm2550_vm2 = vmmov %vm2549_vm0 }
 0x6a4   :  { %v900_v34 = vsel %vm325_vm8, %v1848_v36, %v899_v33  ;;  %v928_v35 = vsel %vm2549_vm0, %v1854_v39, %v927_v63  ;;  %v955_v41 = vrot.slane %v2214_v44, 7  ;;  %v901_v47 = vrot.slane %v2218_v50, 5 }
 0x6a5   :  { %v957_v56 = vrot.slane %v2218_v50, 7  ;;  %v819_v3 = vsel %vm256_vm4, %v817_v38, %v1818_v24  ;;  %v875_v40 = vsel %vm302_vm6, %v873_v46, %v1826_v28  ;;  %v931_v6 = vsel %vm2549_vm0, %v929_v60, %v1854_v39 }
 0x6a6   :  { %v956_v43 = vsel %vm371_vm11, %v1949_v7, %v955_v41  ;;  %v902_v51 = vsel %vm325_vm8, %v899_v33, %v901_v47  ;;  %v954_v28 = vsel %vm371_vm11, %v952_v5, %v1949_v7  ;;  %v789_v48 = vrot.slane %v2218_v50, 1 }
 0x6a7   :  { %826 = vrot.lane.b32.xlu1 %v816_v19, %s1774_s0  ;;  %v958_v62 = vsel %vm371_vm11, %v955_v41, %v957_v56  ;;  %v903_v17 = vsel %vm325_vm8, %v901_v47, %v1848_v36 }
 0x6a8   :  { %v790_v53 = vsel %vm233_vm5, %v787_v49, %v789_v48  ;;  %v791_v5 = vsel %vm233_vm5, %v789_v48, %v1821_v25  ;;  %v959_v49 = vsel %vm371_vm11, %v957_v56, %v1949_v7  ;;  %vm2551_vm5 = vcmask 457728  }
 0x6ab   :  { %854 = vrot.lane.b32.xlu1 %v844_v23, %s1776_s20 }
 0x6af   :  { %882 = vrot.lane.b32.xlu1 %v872_v30, %s1775_s1 }
 0x6b3   :  { %910 = vrot.lane.b32.xlu1 %v900_v34, %s1777_s21 }
 0x6b7   :  { %938 = vrot.lane.b32.xlu1 %v928_v35, %s1778_s22 }
 0x6bb   :  { %966 = vrot.lane.b32.xlu1 %v956_v43, %s1780_s23 }
 0x6bf   :  { %912 = vrot.lane.b32.xlu1 %v902_v51, %s1777_s21 }
 0x6c3   :  { %968 = vrot.lane.b32.xlu1 %v958_v62, %s1780_s23 }
 0x6c7   :  { %830 = vrot.lane.b32.xlu1 %v819_v3, %s1774_s0 }
 0x6cb   :  { %886 = vrot.lane.b32.xlu1 %v875_v40, %s1775_s1 }
 0x6cf   :  { %942 = vrot.lane.b32.xlu1 %v931_v6, %s1778_s22 }
 0x71e   :  { %v617_v8 = vpop.xlane.xlu0 %616 }
 0x71f   :  { %1717 = vrcp.f32 %v617_v8 }
 0x72c   :  { %v1718_v9 = vpop.eup %1717 }
 0x72d   :  { %v627_v11 = vmul.f32 %v1718_v9, %v2137_v0  ;;  %v923_v0 = vsel %vm2550_vm2, %v1854_v39, %v922_v1  ;;  %v814_v1 = vsel %vm256_vm4, %v812_v45, %v1818_v24  ;;  %v898_v24 = vsel %vm325_vm8, %v896_v61, %v1848_v36  ;;  %vm2553_vm8 = vmmov %vm2551_vm5 }
 0x72e   :  { %v926_v45 = vsel %vm2549_vm0, %v924_v2, %v1854_v39  ;;  %v845_v61 = vrot.slane %v2218_v50, 3  ;;  %v793_v2 = vpop.permute.xlu1 %792  ;;  %vm2555_vm0 = vmmov %vm2551_vm5 }
 0x72f   :  { %641 = vrot.lane.b32.xlu0 %v627_v11, %s1781_s24 }
 0x730   :  { %v846_v39 = vsel %vm279_vm7, %v843_v20, %v845_v61  ;;  %v847_v15 = vsel %vm279_vm7, %v845_v61, %v1829_v29  ;;  %v978_v20 = vsel %vm394_vm12, 0.0, %v793_v2  ;;  %vm2552_vm7 = vcmask 523264  }
 0x731   :  { %vm2554_vm2 = vmmov %vm2552_vm7 }
 0x732   :  { %v821_v16 = vpop.permute.xlu1 %820 }
 0x733   :  { %876 = vrot.lane.b32.xlu0 %v867_v12, %s1775_s1 }
 0x736   :  { %v849_v18 = vpop.permute.xlu1 %848 }
 0x737   :  { %904 = vrot.lane.b32.xlu0 %v895_v14, %s1777_s21 }
 0x73a   :  { %v795_v25 = vpop.permute.xlu1 %794 }
 0x73b   :  { %932 = vrot.lane.b32.xlu0 %v923_v0, %s1778_s22 }
 0x73e   :  { %v823_v54 = vpop.permute.xlu1 %822 }
 0x73f   :  { %960 = vrot.lane.b32.xlu0 %v951_v52, %s1780_s23 }
 0x742   :  { %v851_v55 = vpop.permute.xlu1 %850 }
 0x743   :  { %796 = vrot.lane.b32.xlu0 %v786_v57, %s1771_s13 }
 0x746   :  { %v879_v59 = vpop.permute.xlu1 %878 }
 0x747   :  { %824 = vrot.lane.b32.xlu0 %v814_v1, %s1774_s0 }
 0x74a   :  { %v907_v63 = vpop.permute.xlu1 %906 }
 0x74b   :  { %852 = vrot.lane.b32.xlu0 %v842_v4, %s1776_s20 }
 0x74e   :  { %v935_v29 = vpop.permute.xlu1 %934 }
 0x74f   :  { %880 = vrot.lane.b32.xlu0 %v870_v42, %s1775_s1 }
 0x752   :  { %v963_v60 = vpop.permute.xlu1 %962 }
 0x753   :  { %908 = vrot.lane.b32.xlu0 %v898_v24, %s1777_s21 }
 0x756   :  { %v799_v7 = vpop.permute.xlu1 %798 }
 0x757   :  { %936 = vrot.lane.b32.xlu0 %v926_v45, %s1778_s22  ;;  %v981_v24 = vsel %vm394_vm12, 0.0, %v799_v7 }
 0x75a   :  { %v827_v34 = vpop.permute.xlu1 %826 }
 0x75b   :  { %964 = vrot.lane.b32.xlu0 %v954_v28, %s1780_s23  ;;  %v987_v28 = vsel %vm148_vm3, %v981_v24, %v827_v34 }
 0x75e   :  { %v855_v40 = vpop.permute.xlu1 %854 }
 0x75f   :  { %800 = vrot.lane.b32.xlu0 %v790_v53, %s1771_s13  ;;  %v993_v61 = vsel %vm405_vm13, %v987_v28, %v855_v40 }
 0x762   :  { %v883_v8 = vpop.permute.xlu1 %882 }
 0x763   :  { %828 = vrot.lane.b32.xlu0 %v818_v22, %s1774_s0  ;;  %v984_v22 = vsel %vm148_vm3, %v978_v20, %v821_v16 }
 0x766   :  { %v911_v12 = vpop.permute.xlu1 %910 }
 0x767   :  { %856 = vrot.lane.b32.xlu0 %v846_v39, %s1776_s20  ;;  %v999_v39 = vsel %vm411_vm14, %v993_v61, %v883_v8 }
 0x76a   :  { %v939_v52 = vpop.permute.xlu1 %938 }
 0x76b   :  { %884 = vrot.lane.b32.xlu0 %v874_v26, %s1775_s1 }
 0x76e   :  { %v967_v2 = vpop.permute.xlu1 %966 }
 0x76f   :  { %940 = vrot.lane.b32.xlu0 %v930_v27, %s1778_s22  ;;  %v990_v27 = vsel %vm405_vm13, %v984_v22, %v849_v18 }
 0x773   :  { %802 = vrot.lane.b32.xlu0 %v791_v5, %s1771_s13  ;;  %v1005_v5 = vsel %vm417_vm15, %v999_v39, %v911_v12 }
 0x777   :  { %858 = vrot.lane.b32.xlu0 %v847_v15, %s1776_s20  ;;  %v1011_v15 = vsel %vm423_vm1, %v1005_v5, %v939_v52 }
 0x77b   :  { %914 = vrot.lane.b32.xlu0 %v903_v17, %s1777_s21 }
 0x77f   :  { %970 = vrot.lane.b32.xlu0 %v959_v49, %s1780_s23  ;;  %v913_v49 = vpop.permute.xlu1 %912 }
 0x7a1   :  { %v642_v38 = vpop.permute.xlu0 %641 }
 0x7a2   :  { %v652_v46 = vmul.f32 %v642_v38, %v2101_v13  ;;  %v979_v13 = vsel %vm394_vm12, %v2146_v31, %v795_v25 }
 0x7a3   :  { %v985_v33 = vsel %vm148_vm3, %v979_v13, %v823_v54 }
 0x7a4   :  { %1623 = vmatmul.mubr.msk.f32.gmra.mxu0 %vm601_vm9, %v652_v46  ;;  %v991_v43 = vsel %vm405_vm13, %v985_v33, %v851_v55 }
 0x7a5   :  { %v877_v36 = vpop.permute.xlu0 %876  ;;  %1641 = vmatprep.mubr.msk.f32.mxu0 %vm1779_vm10, %v1773_v10  ;;  %v997_v51 = vsel %vm411_vm14, %v991_v43, %v879_v59 }
 0x7a6   :  { %v996_v23 = vsel %vm411_vm14, %v990_v27, %v877_v36  ;;  %v1003_v56 = vsel %vm417_vm15, %v997_v51, %v907_v63 }
 0x7a7   :  { %v1009_v31 = vsel %vm423_vm1, %v1003_v56, %v935_v29  ;;  %v969_v29 = vpop.permute.xlu1 %968 }
 0x7a8   :  { %v1015_v3 = vsel %vm2553_vm8, %v1009_v31, %v963_v60  ;;  %vm2558_vm8 = vmmov %vm2554_vm2 }
 0x7a9   :  { %v905_v19 = vpop.permute.xlu0 %904 }
 0x7aa   :  { %v1002_v30 = vsel %vm417_vm15, %v996_v23, %v905_v19 }
 0x7ab   :  { %v831_v7 = vpop.permute.xlu1 %830 }
 0x7ad   :  { %v933_v26 = vpop.permute.xlu0 %932 }
 0x7ae   :  { %v1008_v35 = vsel %vm423_vm1, %v1002_v30, %v933_v26 }
 0x7af   :  { %v887_v27 = vpop.permute.xlu1 %886 }
 0x7b1   :  { %v961_v41 = vpop.permute.xlu0 %960 }
 0x7b2   :  { %v1014_v47 = vsel %vm2551_vm5, %v1008_v35, %v961_v41  ;;  %vm2556_vm5 = vmmov %vm2554_vm2 }
 0x7b3   :  { %1642 = vmatmul.mubr.msk.f32.vlgmr.msra.gmra.mxu0 %vm2552_vm7, %v1014_v47  ;;  %vm2557_vm7 = vmmov %vm2555_vm0  ;;  %v943_v34 = vpop.permute.xlu1 %942 }
 0x7b4   :  { %1644 = vmatprep.mubr.msk.f32.mxu0 %vm1779_vm10, %v1773_v10  ;;  %v1017_v17 = vsel %vm2557_vm7, %v1011_v15, %v967_v2 }
 0x7b5   :  { %v797_v62 = vpop.permute.xlu0 %796 }
 0x7b6   :  { %v980_v0 = vsel %vm394_vm12, %v2157_v37, %v797_v62 }
 0x7b7   :  { %1645 = vmatmul.mubr.msk.f32.gmra.mxu0 %vm2554_vm2, %v1015_v3  ;;  %vm2559_vm2 = vmmov %vm2555_vm0 }
 0x7b8   :  { %1647 = vmatprep.mubr.msk.f32.mxu0 %vm1779_vm10, %v1773_v10 }
 0x7b9   :  { %v825_v6 = vpop.permute.xlu0 %824 }
 0x7ba   :  { %v986_v57 = vsel %vm148_vm3, %v980_v0, %v825_v6 }
 0x7bd   :  { %v853_v9 = vpop.permute.xlu0 %852 }
 0x7be   :  { %v992_v4 = vsel %vm405_vm13, %v986_v57, %v853_v9 }
 0x7c1   :  { %v881_v11 = vpop.permute.xlu0 %880 }
 0x7c2   :  { %v998_v42 = vsel %vm411_vm14, %v992_v4, %v881_v11 }
 0x7c5   :  { %v909_v14 = vpop.permute.xlu0 %908 }
 0x7c6   :  { %v1004_v45 = vsel %vm417_vm15, %v998_v42, %v909_v14 }
 0x7c9   :  { %v937_v1 = vpop.permute.xlu0 %936 }
 0x7ca   :  { %v1010_v48 = vsel %vm423_vm1, %v1004_v45, %v937_v1 }
 0x7cd   :  { %v965_v53 = vpop.permute.xlu0 %964 }
 0x7ce   :  { %v1016_v37 = vsel %vm2555_vm0, %v1010_v48, %v965_v53  ;;  %vm2560_vm0 = vmmov %vm2556_vm5 }
 0x7cf   :  { %1648 = vmatmul.mubr.msk.f32.gmra.mxu0 %vm2556_vm5, %v1016_v37  ;;  %vm2561_vm5 = vmmov %vm2559_vm2 }
 0x7d0   :  { %1650 = vmatprep.mubr.msk.f32.mxu0 %vm1779_vm10, %v1773_v10  ;;  %vm2562_vm7 = vmmov %vm2560_vm0 }
 0x7d1   :  { %v801_v16 = vpop.permute.xlu0 %800 }
 0x7d2   :  { %v982_v54 = vsel %vm394_vm12, %v2214_v44, %v801_v16 }
 0x7d3   :  { %1651 = vmatmul.mubr.msk.f32.gmra.mxu0 %vm2558_vm8, %v1017_v17 }
 0x7d4   :  { %1653 = vmatprep.mubr.msk.f32.mxu0 %vm1779_vm10, %v1773_v10 }
 0x7d5   :  { %v829_v18 = vpop.permute.xlu0 %828 }
 0x7d6   :  { %v988_v55 = vsel %vm148_vm3, %v982_v54, %v829_v18 }
 0x7d9   :  { %v857_v25 = vpop.permute.xlu0 %856 }
 0x7da   :  { %v994_v59 = vsel %vm405_vm13, %v988_v55, %v857_v25 }
 0x7dd   :  { %v885_v63 = vpop.permute.xlu0 %884 }
 0x7de   :  { %v1000_v38 = vsel %vm411_vm14, %v994_v59, %v885_v63 }
 0x7df   :  { %v1006_v36 = vsel %vm417_vm15, %v1000_v38, %v913_v49 }
 0x7e1   :  { %v941_v46 = vpop.permute.xlu0 %940 }
 0x7e2   :  { %v1012_v60 = vsel %vm423_vm1, %v1006_v36, %v941_v46 }
 0x7e3   :  { %v1018_v19 = vsel %vm2559_vm2, %v1012_v60, %v969_v29 }
 0x7e4   :  { %1654 = vmatmul.mubr.msk.f32.gmra.mxu0 %vm2560_vm0, %v1018_v19 }
 0x7e5   :  { %v803_v20 = vpop.permute.xlu0 %802  ;;  %1656 = vmatprep.mubr.msk.f32.mxu0 %vm1779_vm10, %v1773_v10 }
 0x7e6   :  { %v983_v44 = vsel %vm394_vm12, %v2218_v50, %v803_v20 }
 0x7e7   :  { %v989_v26 = vsel %vm148_vm3, %v983_v44, %v831_v7  ;;  %vm2563_vm3 = vmmov %vm2560_vm0  ;;  %vm2570_vm0 = vcmask 57376  }
 0x7e9   :  { %v859_v22 = vpop.permute.xlu0 %858 }
 0x7ea   :  { %v995_v23 = vsel %vm405_vm13, %v989_v26, %v859_v22  ;;  %vm2564_vm13 = vcmask 64544  }
 0x7eb   :  { %v1001_v30 = vsel %vm411_vm14, %v995_v23, %v887_v27  ;;  %vm2565_vm14 = vmmov %vm2564_vm13 }
 0x7ed   :  { %v915_v13 = vpop.permute.xlu0 %914 }
 0x7ee   :  { %v1007_v33 = vsel %vm417_vm15, %v1001_v30, %v915_v13  ;;  %vm2566_vm15 = vmmov %vm2564_vm13 }
 0x7ef   :  { %v1013_v41 = vsel %vm423_vm1, %v1007_v33, %v943_v34  ;;  %vm2567_vm1 = vmmov %vm2564_vm13 }
 0x7f0   :  { %vm2568_vm8 = vmmov %vm2567_vm1 }
 0x7f1   :  { %v971_v35 = vpop.permute.xlu0 %970  ;;  %vm2569_vm2 = vmmov %vm2567_vm1 }
 0x7f2   :  { %v1019_v43 = vsel %vm2561_vm5, %v1013_v41, %v971_v35  ;;  %vm2571_vm5 = vcmask 24576  }
 0x7f3   :  { %1657 = vmatmul.mubr.msk.f32.gmra.mxu0 %vm2562_vm7, %v1019_v43  ;;  %vm2572_vm7 = vcmask 1041408  }
 0x7f4   :  { %1659 = vmatprep.mubr.msk.f32.mxu0 %vm1779_vm10, %v1773_v10 }
 0x7f7   :  { %1660 = vmatmul.mubr.msk.f32.gmra.mxu0 %vm2563_vm3, %v2077_v21 }
 0x864   :  { %v761_v50 = vpop.f32.mrf.mxu0 }
 0x866   :  { %v1624_v47 = vpop.f32.mrf.mxu0 }
 0x873   :  { %v1104_v51 = vpop.f32.mrf.mxu0 }
 0x874   :  { %v1105_v56 = vadd.f32 %v2038_v32, %v1104_v51 }
 0x875   :  { %v1643_v31 = vpop.f32.mrf.mxu0 }
 0x876   :  { %v2421_v62 = vmax.f32 %v1105_v56, 0.0 }
 0x877   :  { %v1109_v3 = vpop.f32.mrf.mxu0 }
 0x878   :  { %v1110_v40 = vadd.f32 %v2038_v32, %v1109_v3  ;;  %v1145_v6 = vsel %vm2564_vm13, %v2421_v62, -inf }
 0x879   :  { %1146 = vmax.xlane.f32.xlu1 %v1145_v6  ;;  %v1646_v8 = vpop.f32.mrf.mxu0 }
 0x87a   :  { %v2426_v9 = vmax.f32 %v1110_v40, 0.0 }
 0x87c   :  { %v1148_v21 = vsel %vm2565_vm14, %v2426_v9, -inf }
 0x87d   :  { %1149 = vmax.xlane.f32.xlu0 %v1148_v21 }
 0x88f   :  { %v1114_v11 = vpop.f32.mrf.mxu0 }
 0x890   :  { %v1115_v12 = vadd.f32 %v2038_v32, %v1114_v11 }
 0x891   :  { %v1649_v14 = vpop.f32.mrf.mxu0 }
 0x892   :  { %v2431_v0 = vmax.f32 %v1115_v12, 0.0 }
 0x893   :  { %v1119_v52 = vpop.f32.mrf.mxu0 }
 0x894   :  { %v1120_v57 = vadd.f32 %v2038_v32, %v1119_v52  ;;  %v1151_v1 = vsel %vm2566_vm15, %v2431_v0, -inf }
 0x895   :  { %1152 = vmax.xlane.f32.xlu0 %v1151_v1  ;;  %v1652_v4 = vpop.f32.mrf.mxu0 }
 0x896   :  { %v2436_v42 = vmax.f32 %v1120_v57, 0.0 }
 0x898   :  { %v1154_v24 = vsel %vm2567_vm1, %v2436_v42, -inf }
 0x899   :  { %1155 = vmax.xlane.f32.xlu1 %v1154_v24 }
 0x8a4   :  { %v1124_v45 = vpop.f32.mrf.mxu0 }
 0x8a5   :  { %v1125_v28 = vadd.f32 %v2038_v32, %v1124_v45 }
 0x8a6   :  { %v1655_v48 = vpop.f32.mrf.mxu0 }
 0x8a7   :  { %v2441_v53 = vmax.f32 %v1125_v28, 0.0 }
 0x8a9   :  { %v1157_v61 = vsel %vm2568_vm8, %v2441_v53, -inf }
 0x8aa   :  { %1158 = vmax.xlane.f32.xlu0 %v1157_v61 }
 0x8b3   :  { %v1129_v37 = vpop.f32.mrf.mxu0 }
 0x8b4   :  { %v1130_v39 = vadd.f32 %v2038_v32, %v1129_v37 }
 0x8b5   :  { %v1658_v2 = vpop.f32.mrf.mxu0 }
 0x8b6   :  { %v2446_v5 = vmax.f32 %v1130_v39, 0.0 }
 0x8b7   :  { %v1134_v15 = vpop.f32.mrf.mxu0 }
 0x8b8   :  { %v1135_v16 = vadd.f32 %v2038_v32, %v1134_v15  ;;  %v1160_v17 = vsel %vm2569_vm2, %v2446_v5, -inf }
 0x8b9   :  { %1161 = vmax.xlane.f32.xlu1 %v1160_v17  ;;  %v1661_v18 = vpop.f32.mrf.mxu0 }
 0x8ba   :  { %v2451_v49 = vmax.f32 %v1135_v16, 0.0 }
 0x8bc   :  { %v1163_v25 = vsel %vm2570_vm0, %v2451_v49, -inf }
 0x8bd   :  { %1164 = vmax.xlane.f32.xlu0 %v1163_v25 }
 0x902   :  { %v1147_v54 = vpop.xlane.xlu1 %1146 }
 0x903   :  { %v1166_v55 = vsub.f32 %v2421_v62, %v1147_v54 }
 0x905   :  { %v1173_v59 = vmul.f32 1.442695, %v1166_v55 }
 0x906   :  { %v1150_v63 = vpop.xlane.xlu0 %1149 }
 0x907   :  { %1719 = vpow2.f32 %v1173_v59  ;;  %v1167_v29 = vsub.f32 %v2426_v9, %v1150_v63 }
 0x909   :  { %v1175_v32 = vmul.f32 1.442695, %v1167_v29 }
 0x90b   :  { %1721 = vpow2.f32 %v1175_v32 }
 0x914   :  { %v1720_v38 = vpop.eup %1719 }
 0x915   :  { %1194 = vrot.lane.b32.xlu1 %v1720_v38, %s1781_s24 }
 0x918   :  { %v1722_v46 = vpop.eup %1721 }
 0x919   :  { %1196 = vrot.lane.b32.xlu0 %v1722_v46, %s1781_s24 }
 0x91e   :  { %v1153_v36 = vpop.xlane.xlu0 %1152 }
 0x91f   :  { %v1168_v60 = vsub.f32 %v2431_v0, %v1153_v36 }
 0x921   :  { %v1177_v19 = vmul.f32 1.442695, %v1168_v60 }
 0x922   :  { %v1156_v7 = vpop.xlane.xlu1 %1155 }
 0x923   :  { %1723 = vpow2.f32 %v1177_v19  ;;  %v1169_v20 = vsub.f32 %v2436_v42, %v1156_v7 }
 0x925   :  { %v1179_v44 = vmul.f32 1.442695, %v1169_v20 }
 0x927   :  { %1725 = vpow2.f32 %v1179_v44 }
 0x930   :  { %v1724_v22 = vpop.eup %1723 }
 0x931   :  { %1198 = vrot.lane.b32.xlu1 %v1724_v22, %s1781_s24 }
 0x933   :  { %v1159_v26 = vpop.xlane.xlu0 %1158 }
 0x934   :  { %v1726_v27 = vpop.eup %1725  ;;  %v1170_v23 = vsub.f32 %v2441_v53, %v1159_v26 }
 0x935   :  { %1200 = vrot.lane.b32.xlu1 %v1726_v27, %s1781_s24 }
 0x936   :  { %v1181_v13 = vmul.f32 1.442695, %v1170_v23 }
 0x938   :  { %1727 = vpow2.f32 %v1181_v13 }
 0x942   :  { %v1162_v30 = vpop.xlane.xlu1 %1161 }
 0x943   :  { %v1171_v33 = vsub.f32 %v2446_v5, %v1162_v30 }
 0x945   :  { %v1728_v34 = vpop.eup %1727  ;;  %v1183_v35 = vmul.f32 1.442695, %v1171_v33 }
 0x946   :  { %1202 = vrot.lane.b32.xlu0 %v1728_v34, %s1781_s24  ;;  %v1165_v41 = vpop.xlane.xlu0 %1164 }
 0x947   :  { %1729 = vpow2.f32 %v1183_v35  ;;  %v1172_v43 = vsub.f32 %v2451_v49, %v1165_v41 }
 0x949   :  { %v1185_v50 = vmul.f32 1.442695, %v1172_v43 }
 0x94b   :  { %1731 = vpow2.f32 %v1185_v50 }
 0x954   :  { %v1730_v47 = vpop.eup %1729 }
 0x955   :  { %1204 = vrot.lane.b32.xlu1 %v1730_v47, %s1781_s24 }
 0x958   :  { %v1732_v51 = vpop.eup %1731 }
 0x959   :  { %1206 = vrot.lane.b32.xlu0 %v1732_v51, %s1781_s24 }
 0x987   :  { %v1195_v56 = vpop.permute.xlu1 %1194 }
 0x988   :  { %v1215_v31 = vsel %vm601_vm9, %v1195_v56, 0.0 }
 0x989   :  { %1216 = vadd.xlane.f32.xlu1 %v1215_v31 }
 0x98b   :  { %v1197_v3 = vpop.permute.xlu0 %1196 }
 0x98c   :  { %v1218_v40 = vsel %vm601_vm9, %v1197_v3, 0.0 }
 0x98d   :  { %1219 = vadd.xlane.f32.xlu0 %v1218_v40 }
 0x9a3   :  { %v1199_v6 = vpop.permute.xlu1 %1198 }
 0x9a4   :  { %v1221_v8 = vsel %vm601_vm9, %v1199_v6, 0.0 }
 0x9a5   :  { %1222 = vadd.xlane.f32.xlu0 %v1221_v8 }
 0x9a7   :  { %v1201_v21 = vpop.permute.xlu1 %1200 }
 0x9a8   :  { %v1224_v11 = vsel %vm601_vm9, %v1201_v21, 0.0 }
 0x9a9   :  { %1225 = vadd.xlane.f32.xlu1 %v1224_v11 }
 0x9b8   :  { %v1203_v12 = vpop.permute.xlu0 %1202 }
 0x9b9   :  { %v1227_v14 = vsel %vm601_vm9, %v1203_v12, 0.0 }
 0x9ba   :  { %1228 = vadd.xlane.f32.xlu0 %v1227_v14 }
 0x9c7   :  { %v1205_v52 = vpop.permute.xlu1 %1204 }
 0x9c8   :  { %v1230_v57 = vsel %vm601_vm9, %v1205_v52, 0.0 }
 0x9c9   :  { %1231 = vadd.xlane.f32.xlu1 %v1230_v57 }
 0x9cb   :  { %v1207_v1 = vpop.permute.xlu0 %1206 }
 0x9cc   :  { %v1233_v4 = vsel %vm2571_vm5, %v1207_v1, 0.0 }
 0x9cd   :  { %1234 = vadd.xlane.f32.xlu0 %v1233_v4 }
 0xa12   :  { %v1217_v24 = vpop.xlane.xlu1 %1216 }
 0xa13   :  { %1733 = vrcp.f32 %v1217_v24 }
 0xa16   :  { %v1220_v45 = vpop.xlane.xlu0 %1219 }
 0xa17   :  { %1735 = vrcp.f32 %v1220_v45 }
 0xa20   :  { %v1734_v28 = vpop.eup %1733 }
 0xa21   :  { %v1243_v48 = vmul.f32 %v1734_v28, %v1720_v38 }
 0xa23   :  { %1257 = vrot.lane.b32.xlu1 %v1243_v48, %s1781_s24 }
 0xa24   :  { %v1736_v61 = vpop.eup %1735 }
 0xa25   :  { %v1244_v37 = vmul.f32 %v1736_v61, %v1722_v46 }
 0xa27   :  { %1259 = vrot.lane.b32.xlu0 %v1244_v37, %s1781_s24 }
 0xa2e   :  { %v1223_v39 = vpop.xlane.xlu0 %1222 }
 0xa2f   :  { %1737 = vrcp.f32 %v1223_v39 }
 0xa32   :  { %v1226_v2 = vpop.xlane.xlu1 %1225 }
 0xa33   :  { %1739 = vrcp.f32 %v1226_v2 }
 0xa3c   :  { %v1738_v15 = vpop.eup %1737 }
 0xa3d   :  { %v1245_v16 = vmul.f32 %v1738_v15, %v1724_v22 }
 0xa3f   :  { %1261 = vrot.lane.b32.xlu1 %v1245_v16, %s1781_s24 }
 0xa40   :  { %v1740_v17 = vpop.eup %1739 }
 0xa41   :  { %v1246_v18 = vmul.f32 %v1740_v17, %v1726_v27 }
 0xa43   :  { %v1229_v25 = vpop.xlane.xlu0 %1228  ;;  %1263 = vrot.lane.b32.xlu1 %v1246_v18, %s1781_s24 }
 0xa44   :  { %1741 = vrcp.f32 %v1229_v25 }
 0xa51   :  { %v1742_v54 = vpop.eup %1741 }
 0xa52   :  { %v1232_v55 = vpop.xlane.xlu1 %1231  ;;  %v1247_v59 = vmul.f32 %v1742_v54, %v1728_v34 }
 0xa53   :  { %1743 = vrcp.f32 %v1232_v55 }
 0xa54   :  { %1265 = vrot.lane.b32.xlu0 %v1247_v59, %s1781_s24 }
 0xa56   :  { %v1235_v63 = vpop.xlane.xlu0 %1234 }
 0xa57   :  { %1745 = vrcp.f32 %v1235_v63 }
 0xa60   :  { %v1744_v29 = vpop.eup %1743 }
 0xa61   :  { %v1248_v32 = vmul.f32 %v1744_v29, %v1730_v47 }
 0xa63   :  { %1267 = vrot.lane.b32.xlu1 %v1248_v32, %s1781_s24 }
 0xa64   :  { %v1746_v38 = vpop.eup %1745 }
 0xa65   :  { %v1249_v46 = vmul.f32 %v1746_v38, %v1732_v51 }
 0xa67   :  { %1269 = vrot.lane.b32.xlu0 %v1249_v46, %s1781_s24 }
 0xa95   :  { %v1258_v36 = vpop.permute.xlu1 %1257 }
 0xa96   :  { %v1278_v60 = vmul.f32 %v1258_v36, %v2421_v62 }
 0xa98   :  { %1665 = vmatmul.mubr.msk.f32.vlgmr.msra.gmra.mxu1 %vm601_vm9, %v1278_v60  ;;  %v1437_v20 = vrot.slane %v1278_v60, 4 }
 0xa99   :  { %v1260_v19 = vpop.permute.xlu0 %1259  ;;  %1667 = vmatprep.mubr.msk.f32.mxu1 %vm1779_vm10, %v1773_v10 }
 0xa9a   :  { %v1279_v7 = vmul.f32 %v1260_v19, %v2426_v9 }
 0xa9c   :  { %v1438_v44 = vrot.slane %v1279_v7, 4  ;;  %1668 = vmatmul.mubr.msk.f32.gmra.mxu1 %vm601_vm9, %v1279_v7 }
 0xa9d   :  { %1670 = vmatprep.mubr.msk.f32.mxu1 %vm1779_vm10, %v1773_v10 }
 0xa9e   :  { %v1439_v22 = vsel %vm302_vm6, %v1437_v20, %v1438_v44 }
 0xa9f   :  { %v1449_v26 = vsel %vm601_vm9, %v1439_v22, 0.0 }
 0xaa0   :  { %1455 = vst [vmem:[%s2541_s2 + $0x8] sm:$0xff] %v1449_v26 }
 0xab1   :  { %v1262_v62 = vpop.permute.xlu1 %1261 }
 0xab2   :  { %v1280_v27 = vmul.f32 %v1262_v62, %v2431_v0 }
 0xab4   :  { %1671 = vmatmul.mubr.msk.f32.gmra.mxu1 %vm601_vm9, %v1280_v27 }
 0xab5   :  { %v1264_v9 = vpop.permute.xlu1 %1263  ;;  %1673 = vmatprep.mubr.msk.f32.mxu1 %vm1779_vm10, %v1773_v10 }
 0xab6   :  { %v1281_v23 = vmul.f32 %v1264_v9, %v2436_v42 }
 0xab8   :  { %1674 = vmatmul.mubr.msk.f32.gmra.mxu1 %vm601_vm9, %v1281_v23  ;;  %v1442_v33 = vrot.slane %v1281_v23, 2 }
 0xab9   :  { %1676 = vmatprep.mubr.msk.f32.mxu1 %vm1779_vm10, %v1773_v10 }
 0xac6   :  { %v1266_v13 = vpop.permute.xlu0 %1265 }
 0xac7   :  { %v1282_v30 = vmul.f32 %v1266_v13, %v2441_v53 }
 0xac9   :  { %v1443_v34 = vrot.slane %v1282_v30, 2  ;;  %1677 = vmatmul.mubr.msk.f32.gmra.mxu1 %vm601_vm9, %v1282_v30 }
 0xaca   :  { %1679 = vmatprep.mubr.msk.f32.mxu1 %vm1779_vm10, %v1773_v10 }
 0xacb   :  { %v1444_v0 = vsel %vm256_vm4, %v1442_v33, %v1443_v34  ;;  %v1451_v35 = vsel %vm601_vm9, %v1443_v34, 0.0  ;;  %vm1411_vm4 = vcmask 58368  }
 0xacc   :  { %v1447_v42 = vsel %vm2572_vm7, %v1438_v44, %v1444_v0  ;;  %v1453_v41 = vsel %vm302_vm6, %v1451_v35, 0.0 }
 0xacd   :  { %v1450_v43 = vsel %vm601_vm9, %v1447_v42, 0.0  ;;  %1457 = vst [vmem:[%s2541_s2 + $0x18] sm:$0xff] %v1453_v41 }
 0xace   :  { %1456 = vst [vmem:[%s2541_s2 + $0x10] sm:$0xff] %v1450_v43 }
 0xad5   :  { %v1268_v53 = vpop.permute.xlu1 %1267 }
 0xad6   :  { %v1283_v50 = vmul.f32 %v1268_v53, %v2446_v5 }
 0xad8   :  { %1680 = vmatmul.mubr.msk.f32.gmra.mxu1 %vm601_vm9, %v1283_v50 }
 0xad9   :  { %v1270_v47 = vpop.permute.xlu0 %1269  ;;  %1682 = vmatprep.mubr.msk.f32.mxu1 %vm1779_vm10, %v1773_v10 }
 0xada   :  { %v1284_v51 = vmul.f32 %v1270_v47, %v2451_v49 }
 0xadc   :  { %1683 = vmatmul.mubr.msk.f32.gmra.mxu1 %vm601_vm9, %v1284_v51 }
 0xb58   :  { %v1372_v56 = vpop.f32.mrf.mxu1 }
 0xb59   :  { %v1373_v5 = vadd.f32 %v2141_v58, %v1372_v56 }
 0xb5a   :  { %v1666_v31 = vpop.f32.mrf.mxu1 }
 0xb5b   :  { %v1405_v52 = vrot.slane %v1373_v5, 4 }
 0xb5c   :  { %v1377_v3 = vpop.f32.mrf.mxu1 }
 0xb5d   :  { %v1378_v8 = vadd.f32 %v2141_v58, %v1377_v3 }
 0xb5e   :  { %v1669_v40 = vpop.f32.mrf.mxu1 }
 0xb5f   :  { %v1406_v12 = vrot.slane %v1378_v8, 4 }
 0xb61   :  { %v1407_v10 = vsel %vm302_vm6, %v1405_v52, %v1406_v12  ;;  %v1412_v57 = vsel %vm1411_vm4, %v1406_v12, 0.0 }
 0xb62   :  { %v1410_v49 = vsel %vm394_vm12, %v1407_v10, 0.0 }
 0xb63   :  { %v1413_v1 = vadd.f32 %v1412_v57, %v1410_v49 }
 0xb65   :  { %v1414_v4 = vrot.slane %v1413_v1, 4 }
 0xb67   :  { %v1415_v61 = vadd.f32 %v1414_v4, %v1413_v1 }
 0xb69   :  { %v1416_v17 = vrot.slane %v1415_v61, 2 }
 0xb6b   :  { %v1417_v54 = vadd.f32 %v1416_v17, %v1415_v61 }
 0xb6d   :  { %v1418_v63 = vrot.slane %v1417_v54, 1 }
 0xb6f   :  { %v1419_v46 = vadd.f32 %v1418_v63, %v1417_v54 }
 0xb74   :  { %v1382_v6 = vpop.f32.mrf.mxu1 }
 0xb76   :  { %v1672_v21 = vpop.f32.mrf.mxu1 }
 0xb78   :  { %v1386_v11 = vpop.f32.mrf.mxu1 }
 0xb79   :  { %v1387_v24 = vadd.f32 %v2141_v58, %v1386_v11 }
 0xb7a   :  { %v1675_v14 = vpop.f32.mrf.mxu1 }
 0xb7b   :  { %v1422_v37 = vrot.slane %v1387_v24, 4 }
 0xb89   :  { %v1391_v45 = vpop.f32.mrf.mxu1 }
 0xb8a   :  { %v1392_v28 = vadd.f32 %v2141_v58, %v1391_v45 }
 0xb8b   :  { %v1678_v48 = vpop.f32.mrf.mxu1 }
 0xb8c   :  { %v1423_v39 = vrot.slane %v1392_v28, 4 }
 0xb8e   :  { %v1424_v2 = vsel %vm302_vm6, %v1422_v37, %v1423_v39  ;;  %v1428_v15 = vsel %vm1411_vm4, %v1423_v39, 0.0  ;;  %vm2573_vm6 = vmmov %vm2572_vm7 }
 0xb8f   :  { %v1427_v16 = vsel %vm394_vm12, %v1424_v2, 0.0 }
 0xb90   :  { %v1429_v18 = vadd.f32 %v1428_v15, %v1427_v16 }
 0xb92   :  { %v1430_v25 = vrot.slane %v1429_v18, 4 }
 0xb94   :  { %v1431_v55 = vadd.f32 %v1430_v25, %v1429_v18 }
 0xb96   :  { %v1432_v59 = vrot.slane %v1431_v55, 2 }
 0xb98   :  { %v1433_v29 = vadd.f32 %v1432_v59, %v1431_v55  ;;  %v1396_v32 = vpop.f32.mrf.mxu1 }
 0xb9a   :  { %v1434_v38 = vrot.slane %v1433_v29, 1  ;;  %v1681_v58 = vpop.f32.mrf.mxu1 }
 0xb9c   :  { %v1435_v36 = vadd.f32 %v1434_v38, %v1433_v29  ;;  %v1400_v60 = vpop.f32.mrf.mxu1 }
 0xb9e   :  { %v1436_v19 = vsel %vm371_vm11, %v1419_v46, %v1435_v36  ;;  %v1684_v7 = vpop.f32.mrf.mxu1 }
 0xb9f   :  { %v1448_v20 = vsel %vm394_vm12, %v1436_v19, 0.0 }
 0xba0   :  { %v1452_v44 = vsel %vm2573_vm6, %v1448_v20, 0.0 }
 0xba1   :  { %1454 = vst [vmem:[%s2541_s2] sm:$0xff] %v1452_v44 }
 0xba2   :  { %1462 = vsyncpa [#allocation3], 1 }

</bundles_post_ra>
